<compile_context>
chip_gen: v7x
topology: tpu7x:2x2x1
jax: 0.10.0
libtpu: 0.0.40
codegen_flags: <defaults>
</compile_context>

<pallas_src>
import functools

import jax
import jax.numpy as jnp
from jax.experimental import pallas as pl
from jax.experimental.pallas import tpu as pltpu


# --------------------------------------------------------------------------
# Small helpers
# --------------------------------------------------------------------------
def _cdiv(a, b):
    return (a + b - 1) // b


def _round_up(x, m):
    return ((x + m - 1) // m) * m


def _vmem_limit_bytes():
    """Scoped-VMEM limit derived from the physical capacity of this chip."""
    try:
        cap = int(pltpu.get_tpu_info().vmem_capacity_bytes)
    except Exception:
        cap = 64 * 1024 * 1024               # conservative fallback (v7x-sized)
    # ~75% of physical, capped at 96 MiB (=> 48 MiB on v7x, 96 MiB on v5e/v6e).
    return min(int(cap * 3 // 4), 96 * 1024 * 1024)


def _pick_tile(batch, per_row_bytes, resident_bytes, vmem_limit,
               min_tiles=4, groups=1, tb_cap=4096):
    """Batch tile: multiple of 128 (lane-dense layout), sized to the VMEM budget
    with double-buffering, >= min_tiles grid steps when the batch allows, no
    larger than the expected per-relation-group share (so grouped scheduling
    does not over-pad small groups), and minimal padding of the batch."""
    budget = max(vmem_limit // 2 - resident_bytes, 2 * 2 * 128 * per_row_bytes)
    tb_max = budget // (2 * per_row_bytes)          # 2x: double-buffered pipeline
    tb_max = max(128, (tb_max // 128) * 128)
    tb_max = min(tb_max, tb_cap)
    n_tiles = max(min_tiles, _cdiv(batch, tb_max), min(groups, batch))
    tb = _round_up(_cdiv(batch, n_tiles), 128)
    return int(max(128, min(tb, tb_max)))


def _pad_rows(x, rows):
    pad = rows - x.shape[0]
    if pad == 0:
        return x
    return jnp.pad(x, ((0, pad),) + ((0, 0),) * (x.ndim - 1))


def _log_sigmoid(x):
    # Numerically safe log(sigmoid(x)) == -softplus(-x); avoids -inf underflow.
    return jnp.minimum(x, 0.0) - jnp.log(1.0 + jnp.exp(-jnp.abs(x)))


# --------------------------------------------------------------------------
# Pallas kernels
# --------------------------------------------------------------------------
def _kg_group_kernel(rel_ref, cnt_ref, h_ref, r_ref, pt_ref, nt_ref, mr_ref,
                     o_ref):
    """TransR-style structural loss for one relation-homogeneous batch tile.

    Scalar-prefetch refs: rel_ref (per-tile relation id, consumed only by the
    Mr index_map) and cnt_ref (valid rows in this tile).  Emits the tile's
    masked partial loss sum in lane 0 of a (1, 128) output block."""
    del rel_ref                                      # used only in index_maps
    i = pl.program_id(0)
    tb = h_ref.shape[0]

    mr = mr_ref[0]                                   # (D, D) f32
    rel = r_ref[...]                                 # (tb, D)
    dp = h_ref[...] - pt_ref[...]                    # h - pos_tail
    dn = h_ref[...] - nt_ref[...]                    # h - neg_tail
    pos = jnp.dot(dp, mr, preferred_element_type=jnp.float32) + rel
    neg = jnp.dot(dn, mr, preferred_element_type=jnp.float32) + rel

    pos_sc = jnp.sqrt(jnp.sum(pos * pos, axis=-1, keepdims=True))   # (tb, 1)
    neg_sc = jnp.sqrt(jnp.sum(neg * neg, axis=-1, keepdims=True))
    loss = _log_sigmoid(pos_sc - neg_sc)                            # (tb, 1)

    row = jax.lax.broadcasted_iota(jnp.int32, (tb, 1), 0)
    loss = jnp.where(row < cnt_ref[i], loss, 0.0)    # mask group-padding rows
    tile_sum = jnp.sum(loss)                         # scalar partial sum

    lane = jax.lax.broadcasted_iota(jnp.int32, (1, 128), 1)
    o_ref[...] = jnp.where(lane == 0, tile_sum, 0.0)  # single unmasked vst


def _rec_kernel(u_ref, pi_ref, pe_ref, ni_ref, ne_ref, o_ref, *, batch):
    """BPR-style recommendation loss; per-tile masked partial sum output."""
    tb = u_ref.shape[0]
    u = u_ref[...]
    pos = pi_ref[...] + pe_ref[...]                  # item + entity emb
    neg = ni_ref[...] + ne_ref[...]
    pos_s = jnp.sum(u * pos, axis=-1, keepdims=True)
    neg_s = jnp.sum(u * neg, axis=-1, keepdims=True)
    loss = _log_sigmoid(pos_s - neg_s)               # (tb, 1)

    row = jax.lax.broadcasted_iota(jnp.int32, (tb, 1), 0) + pl.program_id(0) * tb
    loss = jnp.where(row < batch, loss, 0.0)         # mask tail-padding rows
    tile_sum = jnp.sum(loss)

    lane = jax.lax.broadcasted_iota(jnp.int32, (1, 128), 1)
    o_ref[...] = jnp.where(lane == 0, tile_sum, 0.0)


# --------------------------------------------------------------------------
# pallas_call wrappers
# --------------------------------------------------------------------------
def kg_loss_pallas(head_emb, rel_emb, pos_tail_emb, neg_tail_emb, rel_ids,
                   mr_table, tb=None):
    """Relation-grouped TransR loss.  Rows are bucketed by relation so every
    grid step uses a single (D, D) Mr block selected via a scalar-prefetched
    index_map."""
    B, D = head_emb.shape
    n_rels = mr_table.shape[0]
    vmem_limit = _vmem_limit_bytes()

    per_row = 4 * D * 4                               # 4 streamed f32 rows
    resident = 2 * D * D * 4 + 2 * 128 * 4            # Mr block + out (dbl-buffered)
    if tb is None:
        tb = _pick_tile(B, per_row, resident, vmem_limit, groups=n_rels)

    # ---- relation-grouped schedule (wrapper-side) ----
    rel_ids = rel_ids.astype(jnp.int32)
    order = jnp.argsort(rel_ids).astype(jnp.int32)
    sorted_rel = rel_ids[order]

    sizes = jnp.bincount(rel_ids, length=n_rels).astype(jnp.int32)
    tiles_per_group = (sizes + tb - 1) // tb
    group_tile_start = (jnp.cumsum(tiles_per_group) - tiles_per_group).astype(jnp.int32)
    group_row_start = (jnp.cumsum(sizes) - sizes).astype(jnp.int32)

    # Exact tile count (one scalar host sync; this wrapper is eager, mirroring
    # the PyTorch module's host-side indexing).
    # TODO(synk): under jit, use the static worst case cdiv(B, tb) + min(n_rels, B)
    # and skip dummy tiles via tile_cnt == 0 instead of this concrete int().
    n_tiles = max(int(jnp.sum(tiles_per_group)), 1)
    n_pad = n_tiles * tb

    # Scatter original row indices into the group-padded layout.
    rank = jnp.arange(B, dtype=jnp.int32) - group_row_start[sorted_rel]
    dest = group_tile_start[sorted_rel] * tb + rank
    src = jnp.zeros((n_pad,), jnp.int32).at[dest].set(order)

    # Per-tile relation id and valid-row count (scalar-prefetched into SMEM).
    tile_idx = jnp.arange(n_tiles, dtype=jnp.int32)
    tiles_cum = jnp.cumsum(tiles_per_group).astype(jnp.int32)
    g_of_tile = jnp.minimum(
        jnp.searchsorted(tiles_cum, tile_idx, side='right').astype(jnp.int32),
        n_rels - 1)
    rows_before = (tile_idx - group_tile_start[g_of_tile]) * tb
    tile_cnt = jnp.clip(sizes[g_of_tile] - rows_before, 0, tb).astype(jnp.int32)
    tile_rel = g_of_tile

    h = head_emb[src]
    r = rel_emb[src]
    pt = pos_tail_emb[src]
    nt = neg_tail_emb[src]

    # TODO(synk): for peak MXU/lane utilisation the model dim D should be a
    # multiple of 128; padding D here would only inflate HBM traffic of this
    # memory-bound kernel, so it is left to the model configuration.
    row_spec = pl.BlockSpec((tb, D), lambda i, rel, cnt: (i, 0))
    grid_spec = pltpu.PrefetchScalarGridSpec(
        num_scalar_prefetch=2,
        grid=(n_tiles,),
        in_specs=[
            row_spec, row_spec, row_spec, row_spec,
            pl.BlockSpec((1, D, D), lambda i, rel, cnt: (rel[i], 0, 0)),
        ],
        out_specs=pl.BlockSpec((1, 128), lambda i, rel, cnt: (0, i)),
    )
    partial = pl.pallas_call(
        _kg_group_kernel,
        out_shape=jax.ShapeDtypeStruct((1, n_tiles * 128), jnp.float32),
        grid_spec=grid_spec,
        compiler_params=pltpu.CompilerParams(
            dimension_semantics=("parallel",),
            vmem_limit_bytes=vmem_limit),
    )(tile_rel, tile_cnt, h, r, pt, nt, mr_table)
    return jnp.sum(partial)


def rec_loss_pallas(users_emb, pos_item, pos_ent, neg_item, neg_ent, tb=None):
    B, D = users_emb.shape
    vmem_limit = _vmem_limit_bytes()
    per_row = 5 * D * 4
    if tb is None:
        tb = _pick_tile(B, per_row, 2 * 128 * 4, vmem_limit)
    n_tiles = _cdiv(B, tb)
    b_pad = n_tiles * tb

    args = [_pad_rows(a, b_pad)
            for a in (users_emb, pos_item, pos_ent, neg_item, neg_ent)]
    row_spec = pl.BlockSpec((tb, D), lambda i: (i, 0))

    partial = pl.pallas_call(
        functools.partial(_rec_kernel, batch=B),
        out_shape=jax.ShapeDtypeStruct((1, n_tiles * 128), jnp.float32),
        grid=(n_tiles,),
        in_specs=[row_spec] * 5,
        out_specs=pl.BlockSpec((1, 128), lambda i: (0, i)),
        compiler_params=pltpu.CompilerParams(
            dimension_semantics=("parallel",),
            vmem_limit_bytes=vmem_limit),
    )(*args)
    return jnp.sum(partial)


# --------------------------------------------------------------------------
# CKE model (JAX port).  Gathers / parameter setup are plain-JAX glue;
# the loss math runs in the Pallas kernels above.
# --------------------------------------------------------------------------
def _xavier_uniform(key, shape):
    if len(shape) == 2:
        fan_in, fan_out = shape[1], shape[0]
    else:  # 3-D (n_rels, dim, dim): matches nn.init.xavier_uniform_ fan calc
        receptive = 1
        for s in shape[2:]:
            receptive *= s
        fan_in = shape[1] * receptive
        fan_out = shape[0] * receptive
    bound = (6.0 / (fan_in + fan_out)) ** 0.5
    return jax.random.uniform(key, shape, jnp.float32, -bound, bound)


class CKE:
    def __init__(self, n_entity, n_user, n_item, n_rels, dim, key):
        self.dim = dim
        ks = jax.random.split(key, 5)
        self.user_emb_matrix = _xavier_uniform(ks[0], (n_user, dim))
        self.item_emb_matrix = _xavier_uniform(ks[1], (n_item, dim))
        self.ent_emb_matrix = _xavier_uniform(ks[2], (n_entity, dim))
        self.Mr_matrix = _xavier_uniform(ks[3], (n_rels, dim, dim))
        self.rel_emb_matrix = _xavier_uniform(ks[4], (n_rels, dim))

    def forward(self, data, name):
        if name == 'kg':
            heads_id = data[:, 0]
            relations_id = data[:, 1]
            pos_tails_id = data[:, 2]
            neg_tails_id = data[:, 3]
            head_emb = self.ent_emb_matrix[heads_id]
            rel_emb = self.rel_emb_matrix[relations_id]
            pos_tail_emb = self.ent_emb_matrix[pos_tails_id]
            neg_tail_emb = self.ent_emb_matrix[neg_tails_id]
            return kg_loss_pallas(head_emb, rel_emb, pos_tail_emb,
                                  neg_tail_emb, relations_id, self.Mr_matrix)
        else:
            users_id = data[:, 0]
            poss_id = data[:, 1]
            negs_id = data[:, 2]
            users_emb = self.user_emb_matrix[users_id]
            # TODO(synk): the PyTorch fallback to a Python random index when an
            # id is out of range is data-dependent host control flow; inputs
            # here are generated in-range so that branch is never taken.
            pos_item = self.item_emb_matrix[poss_id]
            pos_ent = self.ent_emb_matrix[poss_id]
            neg_item = self.item_emb_matrix[negs_id]
            neg_ent = self.ent_emb_matrix[negs_id]
            return rec_loss_pallas(users_emb, pos_item, pos_ent,
                                   neg_item, neg_ent)


# --------------------------------------------------------------------------
# Pure-JAX references for correctness checking
# --------------------------------------------------------------------------
def _kg_ref(model, data):
    h = model.ent_emb_matrix[data[:, 0]][:, None, :]
    r = model.rel_emb_matrix[data[:, 1]][:, None, :]
    pt = model.ent_emb_matrix[data[:, 2]][:, None, :]
    nt = model.ent_emb_matrix[data[:, 3]][:, None, :]
    Mr = model.Mr_matrix[data[:, 1]]
    pos = jnp.linalg.norm(
        (jnp.matmul(h, Mr) + r - jnp.matmul(pt, Mr)).reshape(h.shape[0], -1), axis=1)
    neg = jnp.linalg.norm(
        (jnp.matmul(h, Mr) + r - jnp.matmul(nt, Mr)).reshape(h.shape[0], -1), axis=1)
    return jnp.sum(jnp.log(jax.nn.sigmoid(pos - neg)))


def _rec_ref(model, data):
    u = model.user_emb_matrix[data[:, 0]]
    p = model.item_emb_matrix[data[:, 1]] + model.ent_emb_matrix[data[:, 1]]
    n = model.item_emb_matrix[data[:, 2]] + model.ent_emb_matrix[data[:, 2]]
    return jnp.sum(jnp.log(jax.nn.sigmoid(jnp.sum(u * p, 1) - jnp.sum(u * n, 1))))


if __name__ == "__main__":
    root = jax.random.PRNGKey(0)
    model_key, data_key = jax.random.split(root)

    n_entity, n_user, n_item, n_rels, dim = 64, 16, 32, 4, 32
    batch = 20  # deliberately not a multiple of the tile to exercise masking

    model = CKE(n_entity, n_user, n_item, n_rels, dim, model_key)

    keys = jax.random.split(data_key, 11)
    (k1, k2, k3, k4, k5, k6, k7, k8, k9, k10, k11) = keys
    kg_data = jnp.stack([
        jax.random.randint(k1, (batch,), 0, n_entity),
        jax.random.randint(k2, (batch,), 0, n_rels),
        jax.random.randint(k3, (batch,), 0, n_entity),
        jax.random.randint(k4, (batch,), 0, n_entity),
    ], axis=1)
    rec_data = jnp.stack([
        jax.random.randint(k5, (batch,), 0, n_user),
        jax.random.randint(k6, (batch,), 0, n_item),
        jax.random.randint(k7, (batch,), 0, n_item),
    ], axis=1)

    kg_loss = jax.block_until_ready(model.forward(kg_data, 'kg'))
    rec_loss = jax.block_until_ready(model.forward(rec_data, 'rec'))

    # Skewed relation distribution: relation 0 owns 300 rows so its group spans
    # several tiles, exercising multi-tile groups and partial-tile masking.
    batch2 = 400
    rel2 = jnp.where(jnp.arange(batch2) < 300, 0,
                     jax.random.randint(k8, (batch2,), 1, n_rels))
    kg_data2 = jnp.stack([
        jax.random.randint(k9, (batch2,), 0, n_entity),
        rel2,
        jax.random.randint(k10, (batch2,), 0, n_entity),
        jax.random.randint(k11, (batch2,), 0, n_entity),
    ], axis=1)
    kg_loss2 = jax.block_until_ready(model.forward(kg_data2, 'kg'))

    kg_ref = _kg_ref(model, kg_data)
    kg_ref2 = _kg_ref(model, kg_data2)
    rec_ref = _rec_ref(model, rec_data)

    assert jnp.allclose(kg_loss, kg_ref, atol=1e-3, rtol=1e-4), (kg_loss, kg_ref)
    assert jnp.allclose(kg_loss2, kg_ref2, atol=1e-3, rtol=1e-4), (kg_loss2, kg_ref2)
    assert jnp.allclose(rec_loss, rec_ref, atol=1e-3, rtol=1e-4), (rec_loss, rec_ref)

    print("KERNEL_OK")
</pallas_src>

<mosaic_0001>
module attributes {stable_mosaic.version = 11 : i64} {
  func.func @_kg_group_kernel(%arg0: i32, %arg1: memref<4xi32, #tpu.memory_space<smem>>, %arg2: memref<4xi32, #tpu.memory_space<smem>>, %arg3: memref<128x32xf32, #tpu.memory_space<vmem>>, %arg4: memref<128x32xf32, #tpu.memory_space<vmem>>, %arg5: memref<128x32xf32, #tpu.memory_space<vmem>>, %arg6: memref<128x32xf32, #tpu.memory_space<vmem>>, %arg7: memref<1x32x32xf32, #tpu.memory_space<vmem>>, %arg8: memref<1x128xf32, #tpu.memory_space<vmem>>) attributes {dimension_semantics = [#tpu.dimension_semantics<parallel>], iteration_bounds = array<i64: 4>, scalar_prefetch = 2 : i64, scratch_operands = 0 : i64, tpu.core_type = #tpu.core_type<tc>, window_params = [{transform_indices = @transform_0, window_bounds = array<i64: 128, 32>}, {transform_indices = @transform_1, window_bounds = array<i64: 128, 32>}, {transform_indices = @transform_2, window_bounds = array<i64: 128, 32>}, {transform_indices = @transform_3, window_bounds = array<i64: 128, 32>}, {transform_indices = @transform_4, window_bounds = array<i64: 1, 32, 32>}, {transform_indices = @transform_5, window_bounds = array<i64: 1, 128>}]} {
    %c0 = arith.constant 0 : index
    %c0_0 = arith.constant 0 : index
    %c0_1 = arith.constant 0 : index
    %0 = vector.load %arg7[%c0, %c0_0, %c0_1] : memref<1x32x32xf32, #tpu.memory_space<vmem>>, vector<1x32x32xf32>
    %1 = vector.shape_cast %0 : vector<1x32x32xf32> to vector<32x32xf32>
    %c0_2 = arith.constant 0 : index
    %c0_3 = arith.constant 0 : index
    %2 = vector.load %arg4[%c0_2, %c0_3] : memref<128x32xf32, #tpu.memory_space<vmem>>, vector<128x32xf32>
    %c0_4 = arith.constant 0 : index
    %c0_5 = arith.constant 0 : index
    %3 = vector.load %arg3[%c0_4, %c0_5] : memref<128x32xf32, #tpu.memory_space<vmem>>, vector<128x32xf32>
    %c0_6 = arith.constant 0 : index
    %c0_7 = arith.constant 0 : index
    %4 = vector.load %arg5[%c0_6, %c0_7] : memref<128x32xf32, #tpu.memory_space<vmem>>, vector<128x32xf32>
    %5 = arith.subf %3, %4 : vector<128x32xf32>
    %c0_8 = arith.constant 0 : index
    %c0_9 = arith.constant 0 : index
    %6 = vector.load %arg3[%c0_8, %c0_9] : memref<128x32xf32, #tpu.memory_space<vmem>>, vector<128x32xf32>
    %c0_10 = arith.constant 0 : index
    %c0_11 = arith.constant 0 : index
    %7 = vector.load %arg6[%c0_10, %c0_11] : memref<128x32xf32, #tpu.memory_space<vmem>>, vector<128x32xf32>
    %8 = arith.subf %6, %7 : vector<128x32xf32>
    %cst = arith.constant dense<0.000000e+00> : vector<128x32xf32>
    %9 = tpu.matmul %5, %1, %cst {dimension_numbers = #tpu.dot_dimension_numbers<[1], [0], [0], [1], [0, 0, 1, 1], [], []>} : vector<128x32xf32>, vector<32x32xf32>, vector<128x32xf32> -> vector<128x32xf32>
    %10 = arith.addf %9, %2 : vector<128x32xf32>
    %cst_12 = arith.constant dense<0.000000e+00> : vector<128x32xf32>
    %11 = tpu.matmul %8, %1, %cst_12 {dimension_numbers = #tpu.dot_dimension_numbers<[1], [0], [0], [1], [0, 0, 1, 1], [], []>} : vector<128x32xf32>, vector<32x32xf32>, vector<128x32xf32> -> vector<128x32xf32>
    %12 = arith.addf %11, %2 : vector<128x32xf32>
    %13 = arith.mulf %10, %10 : vector<128x32xf32>
    %cst_13 = arith.constant dense<0.000000e+00> : vector<128xf32>
    %14 = vector.multi_reduction <add>, %13, %cst_13 [1] : vector<128x32xf32> to vector<128xf32>
    %15 = vector.shape_cast %14 : vector<128xf32> to vector<128x1xf32>
    %16 = math.sqrt %15 : vector<128x1xf32>
    %17 = arith.mulf %12, %12 : vector<128x32xf32>
    %cst_14 = arith.constant dense<0.000000e+00> : vector<128xf32>
    %18 = vector.multi_reduction <add>, %17, %cst_14 [1] : vector<128x32xf32> to vector<128xf32>
    %19 = vector.shape_cast %18 : vector<128xf32> to vector<128x1xf32>
    %20 = math.sqrt %19 : vector<128x1xf32>
    %21 = arith.subf %16, %20 : vector<128x1xf32>
    %cst_15 = arith.constant 0.000000e+00 : f32
    %22 = vector.broadcast %cst_15 : f32 to vector<128x1xf32>
    %23 = arith.minimumf %21, %22 : vector<128x1xf32>
    %24 = math.absf %21 : vector<128x1xf32>
    %cst_16 = arith.constant 0.000000e+00 : f32
    %25 = vector.broadcast %cst_16 : f32 to vector<128x1xf32>
    %26 = arith.subf %25, %24 : vector<128x1xf32>
    %27 = math.exp %26 : vector<128x1xf32>
    %cst_17 = arith.constant 1.000000e+00 : f32
    %28 = vector.broadcast %cst_17 : f32 to vector<128x1xf32>
    %29 = arith.addf %28, %27 : vector<128x1xf32>
    %30 = math.log %29 : vector<128x1xf32>
    %31 = arith.subf %23, %30 : vector<128x1xf32>
    %32 = tpu.iota {dimensions = array<i32: 0>} : vector<128x1xi32>
    %33 = arith.index_cast %arg0 : i32 to index
    %34 = memref.load %arg2[%33] : memref<4xi32, #tpu.memory_space<smem>>
    %35 = vector.broadcast %34 : i32 to vector<128x1xi32>
    %36 = arith.cmpi slt, %32, %35 : vector<128x1xi32>
    %cst_18 = arith.constant 0.000000e+00 : f32
    %37 = vector.broadcast %cst_18 : f32 to vector<128x1xf32>
    %38 = arith.select %36, %31, %37 : vector<128x1xi1>, vector<128x1xf32>
    %39 = vector.shape_cast %38 : vector<128x1xf32> to vector<1x128x1xf32>
    %cst_19 = arith.constant dense<0.000000e+00> : vector<1xf32>
    %40 = vector.multi_reduction <add>, %39, %cst_19 [1, 2] : vector<1x128x1xf32> to vector<1xf32>
    %41 = vector.shape_cast %40 : vector<1xf32> to vector<1x1x1xf32>
    %42 = vector.extract %41[0, 0, 0] : f32 from vector<1x1x1xf32>
    %43 = tpu.iota {dimensions = array<i32: 1>} : vector<1x128xi32>
    %c0_i32 = arith.constant 0 : i32
    %44 = vector.broadcast %c0_i32 : i32 to vector<1x128xi32>
    %45 = arith.cmpi eq, %43, %44 : vector<1x128xi32>
    %cst_20 = arith.constant 0.000000e+00 : f32
    %46 = vector.broadcast %42 : f32 to vector<1x128xf32>
    %47 = vector.broadcast %cst_20 : f32 to vector<1x128xf32>
    %48 = arith.select %45, %46, %47 : vector<1x128xi1>, vector<1x128xf32>
    %c0_21 = arith.constant 0 : index
    %c0_22 = arith.constant 0 : index
    %49 = vector.load %arg8[%c0_21, %c0_22] : memref<1x128xf32, #tpu.memory_space<vmem>>, vector<1x128xf32>
    tpu.vector_store %arg8[%c0_21, %c0_22], %48 {strides = array<i32>} : memref<1x128xf32, #tpu.memory_space<vmem>>, vector<1x128xf32>,
    return
  }
  func.func @transform_0(%arg0: i32, %arg1: memref<4xi32, #tpu.memory_space<smem>>, %arg2: memref<4xi32, #tpu.memory_space<smem>>) -> (i32, i32) {
    %c0_i32 = arith.constant 0 : i32
    %c0_i32_0 = arith.constant 0 : i32
    return %arg0, %c0_i32 : i32, i32
  }
  func.func @transform_1(%arg0: i32, %arg1: memref<4xi32, #tpu.memory_space<smem>>, %arg2: memref<4xi32, #tpu.memory_space<smem>>) -> (i32, i32) {
    %c0_i32 = arith.constant 0 : i32
    %c0_i32_0 = arith.constant 0 : i32
    return %arg0, %c0_i32 : i32, i32
  }
  func.func @transform_2(%arg0: i32, %arg1: memref<4xi32, #tpu.memory_space<smem>>, %arg2: memref<4xi32, #tpu.memory_space<smem>>) -> (i32, i32) {
    %c0_i32 = arith.constant 0 : i32
    %c0_i32_0 = arith.constant 0 : i32
    return %arg0, %c0_i32 : i32, i32
  }
  func.func @transform_3(%arg0: i32, %arg1: memref<4xi32, #tpu.memory_space<smem>>, %arg2: memref<4xi32, #tpu.memory_space<smem>>) -> (i32, i32) {
    %c0_i32 = arith.constant 0 : i32
    %c0_i32_0 = arith.constant 0 : i32
    return %arg0, %c0_i32 : i32, i32
  }
  func.func @transform_4(%arg0: i32, %arg1: memref<4xi32, #tpu.memory_space<smem>>, %arg2: memref<4xi32, #tpu.memory_space<smem>>) -> (i32, i32, i32) {
    %0 = arith.index_cast %arg0 : i32 to index
    %1 = memref.load %arg1[%0] : memref<4xi32, #tpu.memory_space<smem>>
    %c0_i32 = arith.constant 0 : i32
    %c0_i32_0 = arith.constant 0 : i32
    %c0_i32_1 = arith.constant 0 : i32
    return %1, %c0_i32, %c0_i32_0 : i32, i32, i32
  }
  func.func @transform_5(%arg0: i32, %arg1: memref<4xi32, #tpu.memory_space<smem>>, %arg2: memref<4xi32, #tpu.memory_space<smem>>) -> (i32, i32) {
    %c0_i32 = arith.constant 0 : i32
    %c0_i32_0 = arith.constant 0 : i32
    return %c0_i32, %arg0 : i32, i32
  }
}

</mosaic_0001>

<bundles_post_ra>
// kernel: tpu_custom_call.1
= control target key start
LH: loop header
LB: loop body
LE: loop exit
PB: predicated region body
PF: predicated region fallthrough
CT: control target
= control target key end

     0   :  { %s2747_s0 = inlined_call_operand.vmem [shape: s32[4], index: 0, kind: input, shape index: {}]   ;;  %s2748_s2 = inlined_call_operand.vmem [shape: f32[512,32], index: 2, kind: input, shape index: {}]   ;;  %s2749_s3 = inlined_call_operand.vmem [shape: f32[512,32], index: 3, kind: input, shape index: {}]   ;;  %s2750_s4 = inlined_call_operand.vmem [shape: f32[512,32], index: 4, kind: input, shape index: {}]   ;;  %s2751_s5 = inlined_call_operand.vmem [shape: f32[512,32], index: 5, kind: input, shape index: {}]   ;;  %s2752_s6 = inlined_call_operand.vmem [shape: f32[4,32,32], index: 6, kind: input, shape index: {}]   ;;  %s2753_s7 = inlined_call_operand.hbm [shape: f32[1,512], index: 7, kind: output, shape index: {}]   ;;  %s2754_s1 = inlined_call_operand.vmem [shape: s32[4], index: 1, kind: input, shape index: {}]  }
   0x1   :  { %s12_s26 = sshll.u32 %s2747_s0, 4  ;;  %s16_s29 = sshll.u32 %s2754_s1, 4  ;;  %s13_s26 = int_to_ptr.vmem [resolvable:$true] %s12_s26  ;;  %s17_s29 = int_to_ptr.vmem [resolvable:$true] %s16_s29 }
   0x2   :  { %s1883_s30 = scalar_lea.vmem %s13_s26, 16  ;;  %p1888_p1 = scmp.lt.s32.totalorder %s13_s26, %s13_s26 }
   0x3   :  { %p1884_p0 = scmp.ne.s32.totalorder %s13_s26, %s1883_s30  ;;  %p1889_p2 = scmp.lt.s32.totalorder %s1883_s30, %s1883_s30 }
   0x5   :  { %p1890_p3 = por %p1889_p2, %p1888_p1 }
   0x7   :  { %p1891_p4 = pnand %p1890_p3, %p1884_p0 }
   0x9   :  { %1894 = shalt.err (!%p1891_p4)  }
   0xa   :  { %s1973_s8 = smov [#allocation3]   ;;  %s1895_s9 = scalar_lea.vmem %s17_s29, 16 }
   0xb   :  { %15 = dma.vmem_to_smem %s13_s26, 16, %s1973_s8, [#allocation2] }
   0xc   :  { %p1896_p5 = scmp.ne.s32.totalorder %s17_s29, %s1895_s9  ;;  %p1900_p6 = scmp.lt.s32.totalorder %s17_s29, %s17_s29 }
   0xd   :  { %p1901_p7 = scmp.lt.s32.totalorder %s1895_s9, %s1895_s9 }
   0xf   :  { %p1902_p8 = por %p1901_p7, %p1900_p6 }
  0x11   :  { %p1903_p9 = pnand %p1902_p8, %p1896_p5 }
  0x13   :  { %1906 = shalt.err (!%p1903_p9)  }
  0x14   :  { %s1974_s0 = smov [#allocation4]  }
  0x15   :  { %19 = dma.vmem_to_smem %s17_s29, 16, %s1974_s0, [#allocation2] }
  0x16   :  { %1951 = dma.done.wait [#allocation2], 32 }
  0x17   :  { %1952 = vsyncadd [#allocation2], 4294967264 }
  0x18   :  { %21 = sfence }
  0x19   :  { %22 = vsyncpa [#allocation6], 0 }
  0x1a   :  { %24 = vsyncpa [#allocation6 + $0x1], 0  ;;  %s2022_s1 = smov 0   ;;  %s2024_s10 = smov 0  }
  0x1b   :  { %s2026_s11 = smov 0   ;;  %s2028_s12 = smov 0  }
  0x1c LB: > { %s2043_s13 = sadd.s32 4294967295, %s1971_s12   ;;  %s1542_s14 = sadd.s32 4294967294, %s1971_s12   ;;  %s1971_s12 = sphi %s2028_s12, %s2760_s12   ;;  %s1967_s11 = sphi %s2026_s11, %s2759_s11   ;;  %s1963_s10 = sphi %s2024_s10, %s2758_s10   ;;  %s1959_s1 = sphi %s2022_s1, %s2757_s1  }
  0x1d   : > { %s2047_s15 = sadd.s32 1, %s1971_s12   ;;  %s169_s16 = sadd.s32 1, %s1967_s11 }
  0x1e   : > { %s166_s17 = ssub.s32 %s1971_s12, %s2047_s15  ;;  %p179_p10 = scmp.ne.s32.totalorder %s1967_s11, %s1963_s10 }
  0x1f   : > { %p167_p11 = scmp.eq.s32.totalorder %s166_s17, 0  ;;  %p180_p12 = scmp.eq.s32.totalorder %s2043_s13, 3 }
  0x20   : > { %p185_p13 = scmp.ne.s32.totalorder %s1963_s10, %s1959_s1  ;;  %p186_p0 = scmp.eq.s32.totalorder %s1542_s14, 3 }
  0x21   : > { %s2058_s18 = scalar_select %p167_p11, %s1967_s11, %s169_s16  }
  0x22   : > { %p2060_p1 = por %p180_p12, %p179_p10  ;;  %p2064_p2 = por %p186_p0, %p185_p13 }
  0x23   : > { %p1545_p3 = scmp.ge.s32.totalorder %s1971_s12, 1  ;;  %p250_p4 = scmp.lt.s32.totalorder %s1971_s12, 5 }
  0x25   : > { %p251_p5 = pnand %p1545_p3, %p250_p4 }
  0x26   : > { %s322_s21 = sld [smem:[#allocation3 + %s2043_s13]] (!%p251_p5)  ;;  %s2072_s22 = sshll.u32 (!%p251_p5), %s2043_s13, 4  ;;  %vm429_vm0 = vcmask (!%p251_p5), 261120  }
  0x27   : > { %254 = sbr.rel (%p251_p5) target bundleno = 779 (0x30b), region = 40  ;;  %p299_p6 = scmp.lt.s32.totalorder (!%p251_p5), %s2072_s22, 63 }
  0x28   : > { %s2705_s9 = scalar_lea.hbm (!%p251_p5), %s2753_s7, %s2072_s22  ;;  %s1975_s16 = smov (!%p251_p5), [#allocation5]  }
  0x29   : > { %s1911_s17 = sshll.u32 (!%p251_p5), %s1975_s16, 4  ;;  %s1912_s17 = int_to_ptr.vmem [resolvable:$false] %s1911_s17 }
  0x2c   : > { %p323_p7 = scmp.lt.s32.totalorder (!%p251_p5), %s322_s21, 3 }
  0x2e   : > { %s300_s23 = scalar_select %p299_p6, %s2072_s22, 63 }
  0x2f   : > { %s2762_s21 = smov (!%p323_p7, %s322_s21), 3 }
  0x30   : > { %s2076_s24 = sshll.u32 %s300_s23, 3  ;;  %s1591_s14 = sshll.u32 %s2762_s21, 5 }
  0x31   : > { %s2082_s27 = scalar_lea.vmem %s2748_s2, %s2076_s24  ;;  %s2088_s30 = scalar_lea.vmem %s2750_s4, %s2076_s24 }
  0x32   : > { %v349_v0 = vld [vmem:[%s2082_s27] sm:$0xff]  ;;  %s2095_s0 = scalar_lea.vmem %s2751_s5, %s2076_s24  ;;  %s327_s23 = scalar_lea.vmem %s2752_s6, %s1591_s14  ;;  %v350_v11 = vld [vmem:[%s2082_s27 + $0x8] sm:$0xff]  ;;  %v351_v14 = vld [vmem:[%s2082_s27 + $0x10] sm:$0xff] }
  0x33   : > { %v365_v1 = vld [vmem:[%s2088_s30] sm:$0xff]  ;;  %v330_v6 = vld [vmem:[%s327_s23 + $0x8] sm:$0xff]  ;;  %v331_v7 = vld [vmem:[%s327_s23 + $0x10] sm:$0xff]  ;;  %s2183_s26 = scalar_lea.vmem %s2749_s3, %s2076_s24  ;;  %s2350_s24 = sld [smem:[#allocation4 + %s2043_s13]] }
  0x34   : > { %v397_v2 = vld [vmem:[%s2095_s0] sm:$0xff]  ;;  %v381_v3 = vsub.f32 %v349_v0, %v365_v1  ;;  %v332_v9 = vld [vmem:[%s327_s23 + $0x18] sm:$0xff]  ;;  %v366_v12 = vld [vmem:[%s2088_s30 + $0x8] sm:$0xff]  ;;  %s296_s13 = sand.u32 1, %s1963_s10  }
  0x35   : > { %v413_v4 = vsub.f32 %v349_v0, %v397_v2  ;;  %v329_v5 = vld [vmem:[%s327_s23] sm:$0xff]  ;;  %v1700_v10 = vpack.c.bf16 %v332_v9, %v331_v7  ;;  %v398_v13 = vld [vmem:[%s2095_s0 + $0x8] sm:$0xff]  ;;  %v367_v15 = vld [vmem:[%s2088_s30 + $0x10] sm:$0xff]  ;;  %v382_v17 = vsub.f32 %v350_v11, %v366_v12  ;;  %s1913_s23 = scalar_lea.vmem %s1912_s17, 32 }
  0x36   : > { %1640 = vmatprep.mubr.msk.f32.mxu0 %vm429_vm0, %v381_v3  ;;  %v1696_v8 = vpack.c.bf16 %v330_v6, %v329_v5  ;;  %v399_v16 = vld [vmem:[%s2095_s0 + $0x10] sm:$0xff]  ;;  %v414_v18 = vsub.f32 %v350_v11, %v398_v13  ;;  %v383_v19 = vsub.f32 %v351_v14, %v367_v15  ;;  %v352_v21 = vld [vmem:[%s2082_s27 + $0x18] sm:$0xff]  ;;  %v353_v24 = vld [vmem:[%s2082_s27 + $0x20] sm:$0xff] }
  0x37   : > { %1672 = vmatprep.mubr.msk.f32.mxu1 %vm429_vm0, %v413_v4  ;;  %v415_v20 = vsub.f32 %v351_v14, %v399_v16  ;;  %v368_v22 = vld [vmem:[%s2088_s30 + $0x18] sm:$0xff]  ;;  %v369_v25 = vld [vmem:[%s2088_s30 + $0x20] sm:$0xff]  ;;  %v354_v31 = vld [vmem:[%s2082_s27 + $0x28] sm:$0xff] }
  0x38   : > { %1697 = vmatprep.subr.bf16.mxu0 %v1696_v8  ;;  %1705 = vmatprep.subr.bf16.mxu1 %v1696_v8  ;;  %v400_v23 = vld [vmem:[%s2095_s0 + $0x18] sm:$0xff]  ;;  %v401_v26 = vld [vmem:[%s2095_s0 + $0x20] sm:$0xff]  ;;  %v384_v27 = vsub.f32 %v352_v21, %v368_v22  ;;  %v385_v29 = vsub.f32 %v353_v24, %v369_v25  ;;  %v370_v32 = vld [vmem:[%s2088_s30 + $0x28] sm:$0xff] }
  0x39   : > { %1699 = vmatpush3.bf16.msra.mxu0 %v1696_v8  ;;  %1707 = vmatpush3.bf16.msra.mxu1 %v1696_v8  ;;  %v416_v28 = vsub.f32 %v352_v21, %v400_v23  ;;  %v417_v30 = vsub.f32 %v353_v24, %v401_v26  ;;  %v402_v33 = vld [vmem:[%s2095_s0 + $0x28] sm:$0xff]  ;;  %v355_v34 = vld [vmem:[%s2082_s27 + $0x30] sm:$0xff]  ;;  %v386_v37 = vsub.f32 %v354_v31, %v370_v32  ;;  %v356_v41 = vld [vmem:[%s2082_s27 + $0x38] sm:$0xff] }
  0x3a   : > { %1701 = vmatprep.subr.bf16.mxu0 %v1700_v10  ;;  %1709 = vmatprep.subr.bf16.mxu1 %v1700_v10  ;;  %v371_v35 = vld [vmem:[%s2088_s30 + $0x30] sm:$0xff]  ;;  %v418_v38 = vsub.f32 %v354_v31, %v402_v33  ;;  %v372_v42 = vld [vmem:[%s2088_s30 + $0x38] sm:$0xff]  ;;  %v357_v44 = vld [vmem:[%s2082_s27 + $0x40] sm:$0xff] }
  0x3b   : > { %v403_v36 = vld [vmem:[%s2095_s0 + $0x30] sm:$0xff]  ;;  %v387_v39 = vsub.f32 %v355_v34, %v371_v35  ;;  %v404_v43 = vld [vmem:[%s2095_s0 + $0x38] sm:$0xff]  ;;  %v373_v45 = vld [vmem:[%s2088_s30 + $0x40] sm:$0xff]  ;;  %v388_v47 = vsub.f32 %v356_v41, %v372_v42 }
  0x3c   : > { %v419_v40 = vsub.f32 %v355_v34, %v403_v36  ;;  %v405_v46 = vld [vmem:[%s2095_s0 + $0x40] sm:$0xff]  ;;  %v420_v48 = vsub.f32 %v356_v41, %v404_v43  ;;  %v389_v49 = vsub.f32 %v357_v44, %v373_v45  ;;  %v358_v51 = vld [vmem:[%s2082_s27 + $0x48] sm:$0xff]  ;;  %v359_v54 = vld [vmem:[%s2082_s27 + $0x50] sm:$0xff] }
  0x3d   : > { %1703 = vmatpush3.bf16.msra.mxu0 %v1700_v10  ;;  %1711 = vmatpush3.bf16.msra.mxu1 %v1700_v10  ;;  %v421_v50 = vsub.f32 %v357_v44, %v405_v46  ;;  %v374_v52 = vld [vmem:[%s2088_s30 + $0x48] sm:$0xff]  ;;  %v375_v55 = vld [vmem:[%s2088_s30 + $0x50] sm:$0xff]  ;;  %v360_v61 = vld [vmem:[%s2082_s27 + $0x58] sm:$0xff] }
  0x3e   : > { %v406_v53 = vld [vmem:[%s2095_s0 + $0x48] sm:$0xff]  ;;  %v407_v56 = vld [vmem:[%s2095_s0 + $0x50] sm:$0xff]  ;;  %v390_v57 = vsub.f32 %v358_v51, %v374_v52  ;;  %v391_v59 = vsub.f32 %v359_v54, %v375_v55  ;;  %v376_v62 = vld [vmem:[%s2088_s30 + $0x58] sm:$0xff] }
  0x3f   : > { %v422_v58 = vsub.f32 %v358_v51, %v406_v53  ;;  %v423_v60 = vsub.f32 %v359_v54, %v407_v56  ;;  %v408_v63 = vld [vmem:[%s2095_s0 + $0x58] sm:$0xff]  ;;  %v361_v0 = vld [vmem:[%s2082_s27 + $0x60] sm:$0xff]  ;;  %v392_v3 = vsub.f32 %v360_v61, %v376_v62  ;;  %v362_v7 = vld [vmem:[%s2082_s27 + $0x68] sm:$0xff] }
  0x40   : > { %1641 = vmatmul.mubr.msk.f32.vlgmr.msra.gmra.mrb[0].mxu0 %vm429_vm0, %v382_v17  ;;  %1673 = vmatmul.mubr.msk.f32.vlgmr.msra.gmra.mrb[0].mxu1 %vm429_vm0, %v414_v18  ;;  %v377_v1 = vld [vmem:[%s2088_s30 + $0x60] sm:$0xff]  ;;  %v424_v4 = vsub.f32 %v360_v61, %v408_v63  ;;  %v378_v8 = vld [vmem:[%s2088_s30 + $0x68] sm:$0xff]  ;;  %v363_v10 = vld [vmem:[%s2082_s27 + $0x70] sm:$0xff] }
  0x41   : > { %1643 = vmatprep.mubr.msk.f32.mxu0 %vm429_vm0, %v383_v19  ;;  %1675 = vmatprep.mubr.msk.f32.mxu1 %vm429_vm0, %v415_v20  ;;  %v409_v2 = vld [vmem:[%s2095_s0 + $0x60] sm:$0xff]  ;;  %v393_v5 = vsub.f32 %v361_v0, %v377_v1  ;;  %v410_v9 = vld [vmem:[%s2095_s0 + $0x68] sm:$0xff]  ;;  %v379_v11 = vld [vmem:[%s2088_s30 + $0x70] sm:$0xff]  ;;  %v394_v13 = vsub.f32 %v362_v7, %v378_v8 }
  0x42   : > { %v425_v6 = vsub.f32 %v361_v0, %v409_v2  ;;  %v411_v12 = vld [vmem:[%s2095_s0 + $0x70] sm:$0xff]  ;;  %v426_v14 = vsub.f32 %v362_v7, %v410_v9  ;;  %v395_v15 = vsub.f32 %v363_v10, %v379_v11  ;;  %v364_v17 = vld [vmem:[%s2082_s27 + $0x78] sm:$0xff]  ;;  %v334_v22 = vld [vmem:[%s2183_s26 + $0x8] sm:$0xff]  ;;  %s297_s27 = scalar_lea.vmem [#allocation5], %s296_s13 }
  0x43   : > { %v427_v16 = vsub.f32 %v363_v10, %v411_v12  ;;  %v380_v18 = vld [vmem:[%s2088_s30 + $0x78] sm:$0xff]  ;;  %v333_v23 = vld [vmem:[%s2183_s26] sm:$0xff]  ;;  %v335_v35 = vld [vmem:[%s2183_s26 + $0x10] sm:$0xff]  ;;  %s1439_s28 = sshll.u32 %s297_s27, 4  ;;  %s2707_s28 = int_to_ptr.vmem [resolvable:$true] %s1439_s28 }
  0x44   : > { %1644 = vmatmul.mubr.msk.f32.gmra.mrb[2].mxu0 %vm429_vm0, %v384_v27  ;;  %1676 = vmatmul.mubr.msk.f32.gmra.mrb[2].mxu1 %vm429_vm0, %v416_v28  ;;  %v412_v19 = vld [vmem:[%s2095_s0 + $0x78] sm:$0xff]  ;;  %v396_v20 = vsub.f32 %v364_v17, %v380_v18  ;;  %v337_v51 = vld [vmem:[%s2183_s26 + $0x20] sm:$0xff]  ;;  %v339_v1 = vld [vmem:[%s2183_s26 + $0x30] sm:$0xff]  ;;  %s1427_s0 = scalar_lea.sflag [#allocation6], %s296_s13  ;;  %s1907_s14 = scalar_lea.vmem %s2707_s28, 16 }
  0x45   : > { %1646 = vmatprep.mubr.msk.f32.mxu0 %vm429_vm0, %v385_v29  ;;  %1678 = vmatprep.mubr.msk.f32.mxu1 %vm429_vm0, %v417_v30  ;;  %v428_v21 = vsub.f32 %v364_v17, %v412_v19  ;;  %v336_v32 = vld [vmem:[%s2183_s26 + $0x18] sm:$0xff]  ;;  %v342_v12 = vld [vmem:[%s2183_s26 + $0x48] sm:$0xff]  ;;  %p1908_p8 = scmp.ne.s32.totalorder %s2707_s28, %s1907_s14  ;;  %p1914_p11 = scmp.lt.s32.totalorder %s2707_s28, %s1912_s17 }
  0x46   : > { %v340_v62 = vld [vmem:[%s2183_s26 + $0x38] sm:$0xff]  ;;  %p1915_p12 = scmp.lt.s32.totalorder %s1913_s23, %s1907_s14 }
  0x47   : > { %p1909_p9 = pnand %p1908_p8, %p2060_p1 }
  0x48   : > { %1647 = vmatmul.mubr.msk.f32.gmra.mrb[4].mxu0 %vm429_vm0, %v386_v37  ;;  %1679 = vmatmul.mubr.msk.f32.gmra.mrb[4].mxu1 %vm429_vm0, %v418_v38  ;;  %p1916_p13 = por %p1915_p12, %p1914_p11 }
  0x49   : > { %1649 = vmatprep.mubr.msk.f32.mxu0 %vm429_vm0, %v387_v39  ;;  %1681 = vmatprep.mubr.msk.f32.mxu1 %vm429_vm0, %v419_v40  ;;  %p1910_p10 = pneg %p1909_p9 }
  0x4b   : > { %p1917_p0 = pnand %p1916_p13, %p1910_p10 }
  0x4c   : > { %1650 = vmatmul.mubr.msk.f32.gmra.mrb[6].mxu0 %vm429_vm0, %v388_v47  ;;  %1682 = vmatmul.mubr.msk.f32.gmra.mrb[6].mxu1 %vm429_vm0, %v420_v48  ;;  %v338_v48 = vld [vmem:[%s2183_s26 + $0x28] sm:$0xff] }
  0x4d   : > { %1652 = vmatprep.mubr.msk.f32.mxu0 %vm429_vm0, %v389_v49  ;;  %1684 = vmatprep.mubr.msk.f32.mxu1 %vm429_vm0, %v421_v50 }
  0x50   : > { %1653 = vmatmul.mubr.msk.f32.gmra.mrb[8].mxu0 %vm429_vm0, %v390_v57  ;;  %1685 = vmatmul.mubr.msk.f32.gmra.mrb[8].mxu1 %vm429_vm0, %v422_v58 }
  0x51   : > { %1655 = vmatprep.mubr.msk.f32.mxu0 %vm429_vm0, %v391_v59  ;;  %1687 = vmatprep.mubr.msk.f32.mxu1 %vm429_vm0, %v423_v60 }
  0x54   : > { %1656 = vmatmul.mubr.msk.f32.gmra.mrb[10].mxu0 %vm429_vm0, %v392_v3  ;;  %1688 = vmatmul.mubr.msk.f32.gmra.mrb[10].mxu1 %vm429_vm0, %v424_v4 }
  0x55   : > { %1658 = vmatprep.mubr.msk.f32.mxu0 %vm429_vm0, %v393_v5  ;;  %1690 = vmatprep.mubr.msk.f32.mxu1 %vm429_vm0, %v425_v6 }
  0x58   : > { %1659 = vmatmul.mubr.msk.f32.gmra.mrb[12].mxu0 %vm429_vm0, %v394_v13  ;;  %1691 = vmatmul.mubr.msk.f32.gmra.mrb[12].mxu1 %vm429_vm0, %v426_v14 }
  0x59   : > { %1661 = vmatprep.mubr.msk.f32.mxu0 %vm429_vm0, %v395_v15  ;;  %1693 = vmatprep.mubr.msk.f32.mxu1 %vm429_vm0, %v427_v16  ;;  %v341_v15 = vld [vmem:[%s2183_s26 + $0x40] sm:$0xff] }
  0x5c   : > { %1662 = vmatmul.mubr.msk.f32.gmra.mrb[14].mxu0 %vm429_vm0, %v396_v20  ;;  %1694 = vmatmul.mubr.msk.f32.gmra.mrb[14].mxu1 %vm429_vm0, %v428_v21 }
 0x113   : > { %v1642_v24 = vpop.f32.mrb[0].mxu0  ;;  %v1674_v25 = vpop.f32.mrb[0].mxu1 }
 0x114   : > { %v550_v26 = vadd.f32 %v1642_v24, %v334_v22  ;;  %v743_v27 = vadd.f32 %v1674_v25, %v334_v22  ;;  %v544_v28 = vpop.f32.mrb[1].mxu0  ;;  %v737_v29 = vpop.f32.mrb[1].mxu1 }
 0x115   : > { %v545_v30 = vadd.f32 %v544_v28, %v333_v23  ;;  %v738_v31 = vadd.f32 %v737_v29, %v333_v23  ;;  %v343_v29 = vld [vmem:[%s2183_s26 + $0x50] sm:$0xff] }
 0x116   : > { %v817_v33 = vmul.f32 %v550_v26, %v550_v26  ;;  %v993_v34 = vmul.f32 %v743_v27, %v743_v27  ;;  %v344_v26 = vld [vmem:[%s2183_s26 + $0x58] sm:$0xff] }
 0x117   : > { %v816_v36 = vmul.f32 %v545_v30, %v545_v30  ;;  %v992_v37 = vmul.f32 %v738_v31, %v738_v31  ;;  %v1645_v38 = vpop.f32.mrb[2].mxu0  ;;  %v1677_v39 = vpop.f32.mrb[2].mxu1 }
 0x118   : > { %v1011_v40 = vsel %vm429_vm0, %v993_v34, 0.0  ;;  %v835_v41 = vsel %vm429_vm0, %v817_v33, 0.0  ;;  %v560_v42 = vadd.f32 %v1645_v38, %v336_v32  ;;  %v753_v43 = vadd.f32 %v1677_v39, %v336_v32  ;;  %v554_v44 = vpop.f32.mrb[3].mxu0  ;;  %v747_v45 = vpop.f32.mrb[3].mxu1 }
 0x119   : > { %1012 = vadd.xlane.f32.xlu1 %v1011_v40  ;;  %836 = vadd.xlane.f32.xlu0 %v835_v41  ;;  %v555_v46 = vadd.f32 %v554_v44, %v335_v35  ;;  %v748_v47 = vadd.f32 %v747_v45, %v335_v35  ;;  %v1008_v54 = vsel %vm429_vm0, %v992_v37, 0.0  ;;  %v832_v55 = vsel %vm429_vm0, %v816_v36, 0.0  ;;  %v346_v40 = vld [vmem:[%s2183_s26 + $0x68] sm:$0xff] }
 0x11a   : > { %v819_v49 = vmul.f32 %v560_v42, %v560_v42  ;;  %v995_v50 = vmul.f32 %v753_v43, %v753_v43  ;;  %v345_v43 = vld [vmem:[%s2183_s26 + $0x60] sm:$0xff] }
 0x11b   : > { %v1648_v52 = vpop.f32.mrb[4].mxu0  ;;  %v1680_v53 = vpop.f32.mrb[4].mxu1  ;;  %v818_v4 = vmul.f32 %v555_v46, %v555_v46  ;;  %v994_v5 = vmul.f32 %v748_v47, %v748_v47 }
 0x11c   : > { %v570_v56 = vadd.f32 %v1648_v52, %v338_v48  ;;  %v763_v57 = vadd.f32 %v1680_v53, %v338_v48  ;;  %v564_v58 = vpop.f32.mrb[5].mxu0  ;;  %v757_v59 = vpop.f32.mrb[5].mxu1  ;;  %v1017_v63 = vsel %vm429_vm0, %v995_v50, 0.0  ;;  %v841_v0 = vsel %vm429_vm0, %v819_v49, 0.0 }
 0x11d   : > { %1009 = vadd.xlane.f32.xlu1 %v1008_v54  ;;  %833 = vadd.xlane.f32.xlu0 %v832_v55  ;;  %v565_v60 = vadd.f32 %v564_v58, %v337_v51  ;;  %v758_v61 = vadd.f32 %v757_v59, %v337_v51  ;;  %v1014_v18 = vsel %vm429_vm0, %v994_v5, 0.0  ;;  %v838_v19 = vsel %vm429_vm0, %v818_v4, 0.0  ;;  %v348_v54 = vld [vmem:[%s2183_s26 + $0x78] sm:$0xff] }
 0x11e   : > { %v821_v13 = vmul.f32 %v570_v56, %v570_v56  ;;  %v997_v14 = vmul.f32 %v763_v57, %v763_v57  ;;  %v347_v57 = vld [vmem:[%s2183_s26 + $0x70] sm:$0xff] }
 0x11f   : > { %v1651_v2 = vpop.f32.mrb[6].mxu0  ;;  %v1683_v3 = vpop.f32.mrb[6].mxu1  ;;  %v820_v32 = vmul.f32 %v565_v60, %v565_v60  ;;  %v996_v33 = vmul.f32 %v758_v61, %v758_v61 }
 0x120   : > { %v580_v6 = vadd.f32 %v1651_v2, %v340_v62  ;;  %v773_v7 = vadd.f32 %v1683_v3, %v340_v62  ;;  %v574_v8 = vpop.f32.mrb[7].mxu0  ;;  %v767_v9 = vpop.f32.mrb[7].mxu1  ;;  %v1023_v27 = vsel %vm429_vm0, %v997_v14, 0.0  ;;  %v847_v28 = vsel %vm429_vm0, %v821_v13, 0.0 }
 0x121   : > { %1018 = vadd.xlane.f32.xlu1 %v1017_v63  ;;  %842 = vadd.xlane.f32.xlu0 %v841_v0  ;;  %v575_v10 = vadd.f32 %v574_v8, %v339_v1  ;;  %v768_v11 = vadd.f32 %v767_v9, %v339_v1  ;;  %v1020_v46 = vsel %vm429_vm0, %v996_v33, 0.0  ;;  %v844_v47 = vsel %vm429_vm0, %v820_v32, 0.0 }
 0x122   : > { %v823_v41 = vmul.f32 %v580_v6, %v580_v6  ;;  %v999_v42 = vmul.f32 %v773_v7, %v773_v7 }
 0x123   : > { %v1654_v16 = vpop.f32.mrb[8].mxu0  ;;  %v1686_v17 = vpop.f32.mrb[8].mxu1  ;;  %v822_v60 = vmul.f32 %v575_v10, %v575_v10  ;;  %v998_v61 = vmul.f32 %v768_v11, %v768_v11 }
 0x124   : > { %v590_v20 = vadd.f32 %v1654_v16, %v342_v12  ;;  %v783_v21 = vadd.f32 %v1686_v17, %v342_v12  ;;  %v584_v22 = vpop.f32.mrb[9].mxu0  ;;  %v777_v23 = vpop.f32.mrb[9].mxu1  ;;  %v1029_v55 = vsel %vm429_vm0, %v999_v42, 0.0  ;;  %v853_v56 = vsel %vm429_vm0, %v823_v41, 0.0 }
 0x125   : > { %1015 = vadd.xlane.f32.xlu1 %v1014_v18  ;;  %839 = vadd.xlane.f32.xlu0 %v838_v19  ;;  %v585_v24 = vadd.f32 %v584_v22, %v341_v15  ;;  %v778_v25 = vadd.f32 %v777_v23, %v341_v15  ;;  %v1026_v6 = vsel %vm429_vm0, %v998_v61, 0.0  ;;  %v850_v7 = vsel %vm429_vm0, %v822_v60, 0.0 }
 0x126   : > { %v825_v4 = vmul.f32 %v590_v20, %v590_v20  ;;  %v1001_v5 = vmul.f32 %v783_v21, %v783_v21 }
 0x127   : > { %v1657_v30 = vpop.f32.mrb[10].mxu0  ;;  %v1689_v31 = vpop.f32.mrb[10].mxu1  ;;  %v824_v10 = vmul.f32 %v585_v24, %v585_v24  ;;  %v1000_v11 = vmul.f32 %v778_v25, %v778_v25 }
 0x128   : > { %v600_v34 = vadd.f32 %v1657_v30, %v344_v26  ;;  %v793_v35 = vadd.f32 %v1689_v31, %v344_v26  ;;  %v594_v36 = vpop.f32.mrb[11].mxu0  ;;  %v787_v37 = vpop.f32.mrb[11].mxu1  ;;  %v1035_v8 = vsel %vm429_vm0, %v1001_v5, 0.0  ;;  %v859_v9 = vsel %vm429_vm0, %v825_v4, 0.0 }
 0x129   : > { %1024 = vadd.xlane.f32.xlu1 %v1023_v27  ;;  %848 = vadd.xlane.f32.xlu0 %v847_v28  ;;  %v595_v38 = vadd.f32 %v594_v36, %v343_v29  ;;  %v788_v39 = vadd.f32 %v787_v37, %v343_v29  ;;  %v1032_v14 = vsel %vm429_vm0, %v1000_v11, 0.0  ;;  %v856_v15 = vsel %vm429_vm0, %v824_v10, 0.0 }
 0x12a   : > { %v827_v12 = vmul.f32 %v600_v34, %v600_v34  ;;  %v1003_v13 = vmul.f32 %v793_v35, %v793_v35 }
 0x12b   : > { %v1660_v44 = vpop.f32.mrb[12].mxu0  ;;  %v1692_v45 = vpop.f32.mrb[12].mxu1  ;;  %v826_v18 = vmul.f32 %v595_v38, %v595_v38  ;;  %v1002_v19 = vmul.f32 %v788_v39, %v788_v39 }
 0x12c   : > { %v610_v48 = vadd.f32 %v1660_v44, %v346_v40  ;;  %v803_v49 = vadd.f32 %v1692_v45, %v346_v40  ;;  %v604_v50 = vpop.f32.mrb[13].mxu0  ;;  %v797_v51 = vpop.f32.mrb[13].mxu1  ;;  %v1041_v16 = vsel %vm429_vm0, %v1003_v13, 0.0  ;;  %v865_v17 = vsel %vm429_vm0, %v827_v12, 0.0 }
 0x12d   : > { %1021 = vadd.xlane.f32.xlu1 %v1020_v46  ;;  %845 = vadd.xlane.f32.xlu0 %v844_v47  ;;  %v605_v52 = vadd.f32 %v604_v50, %v345_v43  ;;  %v798_v53 = vadd.f32 %v797_v51, %v345_v43  ;;  %v1038_v22 = vsel %vm429_vm0, %v1002_v19, 0.0  ;;  %v862_v23 = vsel %vm429_vm0, %v826_v18, 0.0 }
 0x12e   : > { %v829_v20 = vmul.f32 %v610_v48, %v610_v48  ;;  %v1005_v21 = vmul.f32 %v803_v49, %v803_v49 }
 0x12f   : > { %v1695_v58 = vpop.f32.mrb[14].mxu1  ;;  %v1663_v59 = vpop.f32.mrb[14].mxu0  ;;  %v828_v26 = vmul.f32 %v605_v52, %v605_v52  ;;  %v1004_v27 = vmul.f32 %v798_v53, %v798_v53 }
 0x130   : > { %v813_v62 = vadd.f32 %v1695_v58, %v348_v54  ;;  %v620_v63 = vadd.f32 %v1663_v59, %v348_v54  ;;  %v614_v0 = vpop.f32.mrb[15].mxu0  ;;  %v807_v1 = vpop.f32.mrb[15].mxu1  ;;  %v1047_v24 = vsel %vm429_vm0, %v1005_v21, 0.0  ;;  %v871_v25 = vsel %vm429_vm0, %v829_v20, 0.0 }
 0x131   : > { %1030 = vadd.xlane.f32.xlu1 %v1029_v55  ;;  %854 = vadd.xlane.f32.xlu0 %v853_v56  ;;  %v615_v2 = vadd.f32 %v614_v0, %v347_v57  ;;  %v808_v3 = vadd.f32 %v807_v1, %v347_v57  ;;  %v1044_v30 = vsel %vm429_vm0, %v1004_v27, 0.0  ;;  %v868_v31 = vsel %vm429_vm0, %v828_v26, 0.0 }
 0x132   : > { %v1007_v34 = vmul.f32 %v813_v62, %v813_v62  ;;  %v831_v35 = vmul.f32 %v620_v63, %v620_v63 }
 0x133   : > { %v830_v28 = vmul.f32 %v615_v2, %v615_v2  ;;  %v1006_v29 = vmul.f32 %v808_v3, %v808_v3 }
 0x134   : > { %v1053_v36 = vsel %vm429_vm0, %v1007_v34, 0.0  ;;  %v877_v37 = vsel %vm429_vm0, %v831_v35, 0.0 }
 0x135   : > { %1027 = vadd.xlane.f32.xlu1 %v1026_v6  ;;  %851 = vadd.xlane.f32.xlu0 %v850_v7  ;;  %v1050_v32 = vsel %vm429_vm0, %v1006_v29, 0.0  ;;  %v874_v33 = vsel %vm429_vm0, %v830_v28, 0.0 }
 0x139   : > { %1036 = vadd.xlane.f32.xlu1 %v1035_v8  ;;  %860 = vadd.xlane.f32.xlu0 %v859_v9 }
 0x13d   : > { %1033 = vadd.xlane.f32.xlu1 %v1032_v14  ;;  %857 = vadd.xlane.f32.xlu0 %v856_v15 }
 0x141   : > { %1042 = vadd.xlane.f32.xlu1 %v1041_v16  ;;  %866 = vadd.xlane.f32.xlu0 %v865_v17 }
 0x145   : > { %1039 = vadd.xlane.f32.xlu1 %v1038_v22  ;;  %863 = vadd.xlane.f32.xlu0 %v862_v23 }
 0x149   : > { %1048 = vadd.xlane.f32.xlu1 %v1047_v24  ;;  %872 = vadd.xlane.f32.xlu0 %v871_v25 }
 0x14d   : > { %1045 = vadd.xlane.f32.xlu1 %v1044_v30  ;;  %869 = vadd.xlane.f32.xlu0 %v868_v31 }
 0x151   : > { %1051 = vadd.xlane.f32.xlu1 %v1050_v32  ;;  %875 = vadd.xlane.f32.xlu0 %v874_v33 }
 0x155   : > { %1054 = vadd.xlane.f32.xlu1 %v1053_v36  ;;  %878 = vadd.xlane.f32.xlu0 %v877_v37 }
 0x1a6   : > { %v1013_v38 = vpop.xlane.xlu1 %1012  ;;  %v837_v39 = vpop.xlane.xlu0 %836 }
 0x1a7   : > { %1755 = vrsqrt.f32 %v1013_v38  ;;  %vm1065_vm1 = vcmp.eq.f32.partialorder %v1013_v38, inf  ;;  %vm1067_vm2 = vcmp.eq.f32.partialorder %v1013_v38, 0.0  ;;  %v1068_v47 = vand.u32 2147483648, %v1013_v38 }
 0x1a8   : > { %1757 = vrsqrt.f32 %v837_v39  ;;  %vm889_vm3 = vcmp.eq.f32.partialorder %v837_v39, inf  ;;  %vm891_vm4 = vcmp.eq.f32.partialorder %v837_v39, 0.0  ;;  %v892_v51 = vand.u32 2147483648, %v837_v39 }
 0x1aa   : > { %v1010_v40 = vpop.xlane.xlu1 %1009  ;;  %v834_v41 = vpop.xlane.xlu0 %833 }
 0x1ab   : > { %1759 = vrsqrt.f32 %v1010_v40  ;;  %vm1058_vm5 = vcmp.eq.f32.partialorder %v1010_v40, inf  ;;  %vm1060_vm6 = vcmp.eq.f32.partialorder %v1010_v40, 0.0  ;;  %v1061_v56 = vand.u32 2147483648, %v1010_v40 }
 0x1ac   : > { %1761 = vrsqrt.f32 %v834_v41  ;;  %vm882_vm7 = vcmp.eq.f32.partialorder %v834_v41, inf  ;;  %vm884_vm8 = vcmp.eq.f32.partialorder %v834_v41, 0.0  ;;  %v885_v60 = vand.u32 2147483648, %v834_v41 }
 0x1ae   : > { %v2233_v42 = vpop.xlane.xlu1 %1018  ;;  %v2235_v43 = vpop.xlane.xlu0 %842 }
 0x1af   : > { %1763 = vrsqrt.f32 %v2233_v42  ;;  %vm1079_vm9 = vcmp.eq.f32.partialorder %v2233_v42, inf  ;;  %vm1081_vm10 = vcmp.eq.f32.partialorder %v2233_v42, 0.0  ;;  %v1082_v2 = vand.u32 2147483648, %v2233_v42 }
 0x1b0   : > { %1765 = vrsqrt.f32 %v2235_v43  ;;  %vm903_vm11 = vcmp.eq.f32.partialorder %v2235_v43, inf  ;;  %vm905_vm12 = vcmp.eq.f32.partialorder %v2235_v43, 0.0  ;;  %v906_v10 = vand.u32 2147483648, %v2235_v43 }
 0x1b1   : > { %v1756_v44 = vpop.eup %1755 }
 0x1b2   : > { %v1758_v45 = vpop.eup %1757  ;;  %v1064_v46 = vmul.f32 %v1756_v44, %v1013_v38  ;;  %v2239_v48 = vpop.xlane.xlu1 %1015 }
 0x1b3   : > { %v2241_v49 = vpop.xlane.xlu0 %839  ;;  %v888_v50 = vmul.f32 %v1758_v45, %v837_v39  ;;  %1767 = vrsqrt.f32 %v2239_v48  ;;  %vm1072_vm13 = vcmp.eq.f32.partialorder %v2239_v48, inf  ;;  %vm1074_vm14 = vcmp.eq.f32.partialorder %v2239_v48, 0.0 }
 0x1b4   : > { %v1066_v52 = vsel %vm1065_vm1, %v1013_v38, %v1064_v46  ;;  %1769 = vrsqrt.f32 %v2241_v49  ;;  %v1075_v16 = vand.u32 2147483648, %v2239_v48  ;;  %vm896_vm15 = vcmp.eq.f32.partialorder %v2241_v49, inf }
 0x1b5   : > { %v1760_v53 = vpop.eup %1759  ;;  %v1069_v54 = vsel %vm1067_vm2, %v1068_v47, %v1066_v52  ;;  %v890_v55 = vsel %vm889_vm3, %v837_v39, %v888_v50  ;;  %vm898_vm0 = vcmp.eq.f32.partialorder %v2241_v49, 0.0  ;;  %v899_v24 = vand.u32 2147483648, %v2241_v49 }
 0x1b6   : > { %v1762_v57 = vpop.eup %1761  ;;  %v893_v58 = vsel %vm891_vm4, %v892_v51, %v890_v55  ;;  %v1057_v59 = vmul.f32 %v1760_v53, %v1010_v40  ;;  %v2245_v61 = vpop.xlane.xlu1 %1024 }
 0x1b7   : > { %v2247_v62 = vpop.xlane.xlu0 %848  ;;  %v2249_v63 = vsub.f32 %v893_v58, %v1069_v54  ;;  %v881_v0 = vmul.f32 %v1762_v57, %v834_v41  ;;  %1771 = vrsqrt.f32 %v2245_v61  ;;  %vm1093_vm1 = vcmp.eq.f32.partialorder %v2245_v61, inf }
 0x1b8   : > { %v1059_v1 = vsel %vm1058_vm5, %v1010_v40, %v1057_v59  ;;  %1773 = vrsqrt.f32 %v2247_v62  ;;  %vm1095_vm2 = vcmp.eq.f32.partialorder %v2245_v61, 0.0  ;;  %v1096_v32 = vand.u32 2147483648, %v2245_v61 }
 0x1b9   : > { %v1764_v3 = vpop.eup %1763  ;;  %v1201_v4 = vand.u32 2147483647, %v2249_v63  ;;  %v1062_v5 = vsel %vm1060_vm6, %v1061_v56, %v1059_v1  ;;  %v883_v6 = vsel %vm882_vm7, %v834_v41, %v881_v0  ;;  %vm917_vm3 = vcmp.eq.f32.partialorder %v2247_v62, inf }
 0x1ba   : > { %v1766_v7 = vpop.eup %1765  ;;  %v886_v8 = vsel %vm884_vm8, %v885_v60, %v883_v6  ;;  %v1078_v9 = vmul.f32 %v1764_v3, %v2233_v42  ;;  %v2265_v11 = vpop.xlane.xlu1 %1021  ;;  %vm919_vm4 = vcmp.eq.f32.partialorder %v2247_v62, 0.0  ;;  %v920_v47 = vand.u32 2147483648, %v2247_v62 }
 0x1bb   : > { %v2267_v12 = vpop.xlane.xlu0 %845  ;;  %v2269_v13 = vsub.f32 %v886_v8, %v1062_v5  ;;  %v902_v14 = vmul.f32 %v1766_v7, %v2235_v43  ;;  %1775 = vrsqrt.f32 %v2265_v11  ;;  %v1217_v18 = vsub.f32 0.0, %v1201_v4 }
 0x1bc   : > { %v1080_v15 = vsel %vm1079_vm9, %v2233_v42, %v1078_v9  ;;  %1777 = vrsqrt.f32 %v2267_v12  ;;  %v1328_v59 = vlaneseq  ;;  %vm1086_vm5 = vcmp.eq.f32.partialorder %v2265_v11, inf }
 0x1bd   : > { %v1768_v17 = vpop.eup %1767  ;;  %v1200_v19 = vand.u32 2147483647, %v2269_v13  ;;  %v1083_v20 = vsel %vm1081_vm10, %v1082_v2, %v1080_v15  ;;  %v904_v22 = vsel %vm903_vm11, %v2235_v43, %v902_v14  ;;  %v1234_v34 = vmul.f32 1.442695, %v1217_v18 }
 0x1be   : > { %v1770_v21 = vpop.eup %1769  ;;  %v1071_v23 = vmul.f32 %v1768_v17, %v2239_v48  ;;  %v2290_v25 = vpop.xlane.xlu1 %1030  ;;  %v907_v27 = vsel %vm905_vm12, %v906_v10, %v904_v22  ;;  %v1089_v60 = vand.u32 2147483648, %v2265_v11  ;;  %vm1088_vm6 = vcmp.eq.f32.partialorder %v2265_v11, 0.0 }
 0x1bf   : > { %v1216_v26 = vsub.f32 0.0, %v1200_v19  ;;  %v895_v28 = vmul.f32 %v1770_v21, %v2241_v49  ;;  %v2296_v29 = vpop.xlane.xlu0 %854  ;;  %v2298_v30 = vsub.f32 %v907_v27, %v1083_v20  ;;  %vm910_vm7 = vcmp.eq.f32.partialorder %v2267_v12, inf }
 0x1c0   : > { %v1073_v31 = vsel %vm1072_vm13, %v2239_v48, %v1071_v23  ;;  %v913_v5 = vand.u32 2147483648, %v2267_v12  ;;  %vm912_vm8 = vcmp.eq.f32.partialorder %v2267_v12, 0.0  ;;  %vm1107_vm9 = vcmp.eq.f32.partialorder %v2290_v25, inf }
 0x1c1   : > { %v1772_v33 = vpop.eup %1771  ;;  %v1232_v35 = vmul.f32 1.442695, %v1216_v26  ;;  %v1076_v36 = vsel %vm1074_vm14, %v1075_v16, %v1073_v31  ;;  %v897_v37 = vsel %vm896_vm15, %v2241_v49, %v895_v28  ;;  %v1203_v39 = vand.u32 2147483647, %v2298_v30 }
 0x1c2   : > { %v1774_v38 = vpop.eup %1773  ;;  %v900_v40 = vsel %vm898_vm0, %v899_v24, %v897_v37  ;;  %v1092_v41 = vmul.f32 %v1772_v33, %v2245_v61  ;;  %v2319_v44 = vpop.xlane.xlu1 %1027  ;;  %v2359_v16 = vshrl.u32 %v1328_v59, 7  ;;  %vm1109_vm10 = vcmp.eq.f32.partialorder %v2290_v25, 0.0 }
 0x1c3   : > { %1779 = vpow2.f32 %v1232_v35  ;;  %v2315_v42 = vsub.f32 %v900_v40, %v1076_v36  ;;  %v916_v43 = vmul.f32 %v1774_v38, %v2247_v62  ;;  %v1219_v45 = vsub.f32 0.0, %v1203_v39  ;;  %v2330_v51 = vpop.xlane.xlu0 %851 }
 0x1c4   : > { %v1094_v46 = vsel %vm1093_vm1, %v2245_v61, %v1092_v41  ;;  %1781 = vrsqrt.f32 %v2290_v25  ;;  %v1110_v20 = vand.u32 2147483648, %v2290_v25  ;;  %vm931_vm11 = vcmp.eq.f32.partialorder %v2296_v29, inf }
 0x1c5   : > { %1783 = vpow2.f32 %v1234_v34  ;;  %v1202_v48 = vand.u32 2147483647, %v2315_v42  ;;  %v1097_v49 = vsel %vm1095_vm2, %v1096_v32, %v1094_v46  ;;  %v918_v50 = vsel %vm917_vm3, %v2247_v62, %v916_v43  ;;  %v1776_v52 = vpop.eup %1775 }
 0x1c6   : > { %v1238_v53 = vmul.f32 1.442695, %v1219_v45  ;;  %v921_v54 = vsel %vm919_vm4, %v920_v47, %v918_v50  ;;  %1785 = vrsqrt.f32 %v2296_v29  ;;  %v1085_v57 = vmul.f32 %v1776_v52, %v2265_v11  ;;  %v1778_v58 = vpop.eup %1777  ;;  %v2340_v1 = vpop.xlane.xlu1 %1036 }
 0x1c7   : > { %v1218_v55 = vsub.f32 0.0, %v1202_v48  ;;  %v2333_v56 = vsub.f32 %v921_v54, %v1097_v49  ;;  %v909_v2 = vmul.f32 %v1778_v58, %v2267_v12  ;;  %v2347_v6 = vpop.xlane.xlu0 %860  ;;  %v934_v28 = vand.u32 2147483648, %v2296_v29 }
 0x1c8   : > { %1787 = vpow2.f32 %v1238_v53  ;;  %v1087_v0 = vsel %vm1086_vm5, %v2265_v11, %v1085_v57  ;;  %v2377_v32 = vadd.s32 8, %v2359_v16  ;;  %vm933_vm12 = vcmp.eq.f32.partialorder %v2296_v29, 0.0 }
 0x1c9   : > { %v1236_v61 = vmul.f32 1.442695, %v1218_v55  ;;  %v1205_v62 = vand.u32 2147483647, %v2333_v56  ;;  %1789 = vrsqrt.f32 %v2319_v44  ;;  %v1090_v4 = vsel %vm1088_vm6, %v1089_v60, %v1087_v0 }
 0x1ca   : > { %v911_v7 = vsel %vm910_vm7, %v2267_v12, %v909_v2  ;;  %v2364_v12 = vpop.xlane.xlu1 %1033  ;;  %v2382_v35 = vstv %s2350_s24  ;;  %v2386_v39 = vadd.s32 24, %v2359_v16  ;;  %vm1100_vm13 = vcmp.eq.f32.partialorder %v2319_v44, inf }
 0x1cb   : > { %1791 = vpow2.f32 %v1236_v61  ;;  %v1221_v3 = vsub.f32 0.0, %v1205_v62  ;;  %v914_v10 = vsel %vm912_vm8, %v913_v5, %v911_v7  ;;  %v2372_v24 = vpop.xlane.xlu0 %857  ;;  %vm1102_vm14 = vcmp.eq.f32.partialorder %v2319_v44, 0.0 }
 0x1cc   : > { %1793 = vrsqrt.f32 %v2330_v51  ;;  %v2355_v14 = vsub.f32 %v914_v10, %v1090_v4  ;;  %vm924_vm15 = vcmp.eq.f32.partialorder %v2330_v51, inf  ;;  %v927_v53 = vand.u32 2147483648, %v2330_v51 }
 0x1cd   : > { %v1780_v8 = vpop.eup %1779  ;;  %v1242_v9 = vmul.f32 1.442695, %v1221_v3  ;;  %1795 = vrsqrt.f32 %v2340_v1  ;;  %vm926_vm0 = vcmp.eq.f32.partialorder %v2330_v51, 0.0  ;;  %vm1121_vm1 = vcmp.eq.f32.partialorder %v2340_v1, inf }
 0x1ce   : > { %v1782_v11 = vpop.eup %1781  ;;  %v1204_v19 = vand.u32 2147483647, %v2355_v14  ;;  %v1264_v21 = vadd.f32 1.0, %v1780_v8  ;;  %v2394_v43 = vpop.xlane.xlu1 %1042  ;;  %vm1123_vm2 = vcmp.eq.f32.partialorder %v2340_v1, 0.0  ;;  %v1124_v62 = vand.u32 2147483648, %v2340_v1 }
 0x1cf   : > { %v1784_v15 = vpop.eup %1783  ;;  %v1106_v17 = vmul.f32 %v1782_v11, %v2290_v25  ;;  %1797 = vpow2.f32 %v1242_v9  ;;  %vm945_vm3 = vcmp.eq.f32.partialorder %v2347_v6, inf  ;;  %v2409_v0 = vpop.xlane.xlu0 %866  ;;  %vm947_vm4 = vcmp.eq.f32.partialorder %v2347_v6, 0.0 }
 0x1d0   : > { %v1786_v18 = vpop.eup %1785  ;;  %1799 = vrsqrt.f32 %v2347_v6  ;;  %v1220_v26 = vsub.f32 0.0, %v1204_v19  ;;  %v1265_v33 = vadd.f32 1.0, %v1784_v15  ;;  %vm1114_vm5 = vcmp.eq.f32.partialorder %v2364_v12, inf }
 0x1d1   : > { %v1108_v22 = vsel %vm1107_vm9, %v2290_v25, %v1106_v17  ;;  %v930_v23 = vmul.f32 %v1786_v18, %v2296_v29  ;;  %1801 = vrsqrt.f32 %v2364_v12  ;;  %vm1116_vm6 = vcmp.eq.f32.partialorder %v2364_v12, 0.0 }
 0x1d2   : > { %v1111_v27 = vsel %vm1109_vm10, %v1110_v20, %v1108_v22  ;;  %v1788_v31 = vpop.eup %1787  ;;  %v1240_v36 = vmul.f32 1.442695, %v1220_v26  ;;  %1803 = vrsqrt.f32 %v2372_v24  ;;  %v2423_v15 = vpop.xlane.xlu1 %1039  ;;  %vm938_vm7 = vcmp.eq.f32.partialorder %v2372_v24, inf }
 0x1d3   : > { %v932_v34 = vsel %vm931_vm11, %v2296_v29, %v930_v23  ;;  %v1790_v25 = vpop.eup %1789  ;;  %1805 = vlog2.f32 %v1264_v21  ;;  %v1103_v29 = vand.u32 2147483648, %v2319_v44  ;;  %v1267_v50 = vadd.f32 1.0, %v1788_v31 }
 0x1d4   : > { %v935_v37 = vsel %vm933_vm12, %v934_v28, %v932_v34  ;;  %v1099_v41 = vmul.f32 %v1790_v25, %v2319_v44  ;;  %1807 = vpow2.f32 %v1240_v36  ;;  %v1117_v23 = vand.u32 2147483648, %v2364_v12  ;;  %v2440_v34 = vpop.xlane.xlu0 %863 }
 0x1d5   : > { %v1792_v38 = vpop.eup %1791  ;;  %v2388_v40 = vsub.f32 %v935_v37, %v1111_v27  ;;  %1809 = vlog2.f32 %v1265_v33  ;;  %v941_v33 = vand.u32 2147483648, %v2372_v24  ;;  %vm1348_vm8 = vcmp.lt.s32.totalorder %v2377_v32, %v2382_v35 }
 0x1d6   : > { %v1794_v45 = vpop.eup %1793  ;;  %v1266_v46 = vadd.f32 1.0, %v1792_v38  ;;  %v1101_v48 = vsel %vm1100_vm13, %v2319_v44, %v1099_v41  ;;  %1811 = vrsqrt.f32 %v2394_v43  ;;  %vm940_vm9 = vcmp.eq.f32.partialorder %v2372_v24, 0.0 }
 0x1d7   : > { %v1207_v47 = vand.u32 2147483647, %v2388_v40  ;;  %v1796_v49 = vpop.eup %1795  ;;  %v923_v52 = vmul.f32 %v1794_v45, %v2330_v51  ;;  %v1104_v55 = vsel %vm1102_vm14, %v1103_v29, %v1101_v48  ;;  %v1184_v29 = vmin.f32 %v2269_v13, 0.0 }
 0x1d8   : > { %v1120_v57 = vmul.f32 %v1796_v49, %v2340_v1  ;;  %1813 = vlog2.f32 %v1266_v46  ;;  %vm1379_vm10 = vcmask 7168   ;;  %vm1347_vm11 = vcmp.lt.s32.totalorder %v2359_v16, %v2382_v35 }
 0x1d9   : > { %v1223_v54 = vsub.f32 0.0, %v1207_v47  ;;  %v1798_v58 = vpop.eup %1797  ;;  %v925_v60 = vsel %vm924_vm15, %v2330_v51, %v923_v52  ;;  %v948_v51 = vand.u32 2147483648, %v2347_v6  ;;  %1815 = vlog2.f32 %v1267_v50  ;;  %v2451_v47 = vpop.xlane.xlu1 %1048 }
 0x1da   : > { %v1800_v44 = vpop.eup %1799  ;;  %v928_v61 = vsel %vm926_vm0, %v927_v53, %v925_v60  ;;  %v1122_v4 = vsel %vm1121_vm1, %v2340_v1, %v1120_v57  ;;  %1817 = vrsqrt.f32 %v2409_v0  ;;  %v1269_v18 = vadd.f32 1.0, %v1798_v58  ;;  %v2464_v57 = vpop.xlane.xlu0 %872 }
 0x1db   : > { %v1802_v2 = vpop.eup %1801  ;;  %v2411_v3 = vsub.f32 %v928_v61, %v1104_v55  ;;  %v1246_v5 = vmul.f32 1.442695, %v1223_v54  ;;  %v944_v7 = vmul.f32 %v1800_v44, %v2347_v6  ;;  %v1125_v10 = vsel %vm1123_vm2, %v1124_v62, %v1122_v4 }
 0x1dc   : > { %v1804_v8 = vpop.eup %1803  ;;  %v1113_v11 = vmul.f32 %v1802_v2, %v2364_v12  ;;  %vm1135_vm12 = vcmp.eq.f32.partialorder %v2394_v43, inf  ;;  %v1185_v52 = vmin.f32 %v2249_v63, 0.0  ;;  %vm1350_vm13 = vcmp.lt.s32.totalorder %v2386_v39, %v2382_v35 }
 0x1dd   : > { %v1206_v9 = vand.u32 2147483647, %v2411_v3  ;;  %v1806_v17 = vpop.eup %1805  ;;  %v946_v19 = vsel %vm945_vm3, %v2347_v6, %v944_v7  ;;  %v937_v20 = vmul.f32 %v1804_v8, %v2372_v24  ;;  %1819 = vpow2.f32 %v1246_v5  ;;  %v2473_v8 = vpop.xlane.xlu1 %1045 }
 0x1de   : > { %v1808_v21 = vpop.eup %1807  ;;  %v949_v1 = vsel %vm947_vm4, %v948_v51, %v946_v19  ;;  %v1115_v31 = vsel %vm1114_vm5, %v2364_v12, %v1113_v11  ;;  %v1281_v38 = vmul.f32 0.6931472, %v1806_v17  ;;  %1821 = vlog2.f32 %v1269_v18 }
 0x1df   : > { %v1222_v22 = vsub.f32 0.0, %v1206_v9  ;;  %v1810_v26 = vpop.eup %1809  ;;  %v1268_v27 = vadd.f32 1.0, %v1808_v21  ;;  %v2434_v28 = vsub.f32 %v949_v1, %v1125_v10  ;;  %v1118_v25 = vsel %vm1116_vm6, %v1117_v23, %v1115_v31 }
 0x1e0   : > { %v939_v36 = vsel %vm938_vm7, %v2372_v24, %v937_v20  ;;  %v1812_v37 = vpop.eup %1811  ;;  %v1283_v12 = vmul.f32 0.6931472, %v1810_v26  ;;  %v1331_v24 = vadd.s32 16, %v2359_v16  ;;  %v1312_v53 = vsub.f32 %v1184_v29, %v1281_v38 }
 0x1e1   : > { %v1244_v6 = vmul.f32 1.442695, %v1222_v22  ;;  %v1209_v41 = vand.u32 2147483647, %v2434_v28  ;;  %1823 = vlog2.f32 %v1268_v27  ;;  %v942_v45 = vsel %vm940_vm9, %v941_v33, %v939_v36  ;;  %v2488_v22 = vpop.xlane.xlu0 %869  ;;  %v2507_v38 = vpop.xlane.xlu1 %1051 }
 0x1e2   : > { %v1134_v46 = vmul.f32 %v1812_v37, %v2394_v43  ;;  %v1814_v48 = vpop.eup %1813  ;;  %v2453_v50 = vsub.f32 %v942_v45, %v1118_v25  ;;  %v1186_v60 = vmin.f32 %v2315_v42, 0.0  ;;  %v1138_v62 = vand.u32 2147483648, %v2394_v43 }
 0x1e3   : > { %1825 = vpow2.f32 %v1244_v6  ;;  %v1225_v49 = vsub.f32 0.0, %v1209_v41  ;;  %v1816_v13 = vpop.eup %1815  ;;  %v1285_v44 = vmul.f32 0.6931472, %v1814_v48  ;;  %v1313_v2 = vsub.f32 %v1185_v52, %v1283_v12 }
 0x1e4   : > { %1827 = vrsqrt.f32 %v2423_v15  ;;  %v1136_v55 = vsel %vm1135_vm12, %v2394_v43, %v1134_v46  ;;  %v1818_v58 = vpop.eup %1817  ;;  %v1208_v61 = vand.u32 2147483647, %v2453_v50  ;;  %vm1137_vm14 = vcmp.eq.f32.partialorder %v2394_v43, 0.0 }
 0x1e5   : > { %v1250_v54 = vmul.f32 1.442695, %v1225_v49  ;;  %v958_v63 = vmul.f32 %v1818_v58, %v2409_v0  ;;  %vm959_vm15 = vcmp.eq.f32.partialorder %v2409_v0, inf  ;;  %v1287_v4 = vmul.f32 0.6931472, %v1816_v13 }
 0x1e6   : > { %v1224_v51 = vsub.f32 0.0, %v1208_v61  ;;  %v1139_v5 = vsel %vm1137_vm14, %v1138_v62, %v1136_v55  ;;  %v962_v7 = vand.u32 2147483648, %v2409_v0  ;;  %v1363_v42 = vsel %vm1347_vm11, %v1312_v53, 0.0 }
 0x1e7   : > { %1829 = vpow2.f32 %v1250_v54  ;;  %v960_v9 = vsel %vm959_vm15, %v2409_v0, %v958_v63  ;;  %vm961_vm0 = vcmp.eq.f32.partialorder %v2409_v0, 0.0  ;;  %v1820_v43 = vpop.eup %1819  ;;  %v1187_v10 = vmin.f32 %v2298_v30, 0.0 }
 0x1e8   : > { %v1314_v11 = vsub.f32 %v1186_v60, %v1285_v44  ;;  %v963_v17 = vsel %vm961_vm0, %v962_v7, %v960_v9  ;;  %1831 = vrsqrt.f32 %v2440_v34  ;;  %v1822_v18 = vpop.eup %1821  ;;  %v1364_v19 = vsel %vm1348_vm8, %v1313_v2, 0.0  ;;  %v2537_v60 = vpop.xlane.xlu1 %1054 }
 0x1e9   : > { %vm1349_vm1 = vcmp.lt.s32.totalorder %v1331_v24, %v2382_v35  ;;  %v1248_v20 = vmul.f32 1.442695, %v1224_v51  ;;  %v2486_v21 = vsub.f32 %v963_v17, %v1139_v5  ;;  %v1380_v1 = vsel %vm1379_vm10, %v1363_v42, 0.0 }
 0x1ea   : > { %v1315_v30 = vsub.f32 %v1187_v10, %v1287_v4  ;;  %v2492_v23 = vadd.s32 40, %v2359_v16  ;;  %v2495_v26 = vadd.s32 32, %v2359_v16  ;;  %v1271_v32 = vadd.f32 1.0, %v1820_v43 }
 0x1eb   : > { %v1824_v0 = vpop.eup %1823  ;;  %v2498_v31 = vadd.s32 48, %v2359_v16  ;;  %v1211_v33 = vand.u32 2147483647, %v2486_v21  ;;  %1833 = vrsqrt.f32 %v2451_v47  ;;  %v1381_v25 = vsel %vm1379_vm10, %v1364_v19, 0.0 }
 0x1ec   : > { %v1365_v36 = vsel %vm1349_vm1, %v1314_v11, 0.0  ;;  %v1189_v37 = vmin.f32 %v2333_v56, 0.0  ;;  %1835 = vrsqrt.f32 %v2464_v57  ;;  %v2509_v41 = vadd.f32 %v1381_v25, %v1380_v1 }
 0x1ed   : > { %v1826_v27 = vpop.eup %1825  ;;  %v1188_v29 = vmin.f32 %v2355_v14, 0.0  ;;  %1837 = vpow2.f32 %v1248_v20  ;;  %v2516_v46 = vsel %vm1350_vm13, %v1315_v30, 0.0  ;;  %v2518_v48 = vmul.f32 0.6931472, %v1822_v18  ;;  %v2524_v14 = vpop.xlane.xlu0 %875 }
 0x1ee   : > { %v1828_v6 = vpop.eup %1827  ;;  %v1270_v12 = vadd.f32 1.0, %v1826_v27  ;;  %1839 = vrsqrt.f32 %v2473_v8  ;;  %v2522_v49 = vsel %vm1379_vm10, %v1365_v36, 0.0  ;;  %v1289_v24 = vmul.f32 0.6931472, %v1824_v0 }
 0x1ef   : > { %v1127_v45 = vmul.f32 %v1828_v6, %v2423_v15  ;;  %1841 = vlog2.f32 %v1271_v32  ;;  %v1227_v13 = vsub.f32 0.0, %v1211_v33  ;;  %vm1128_vm2 = vcmp.eq.f32.partialorder %v2423_v15, inf }
 0x1f0   : > { %vm1130_vm3 = vcmp.eq.f32.partialorder %v2423_v15, 0.0  ;;  %v1131_v39 = vand.u32 2147483648, %v2423_v15  ;;  %1843 = vrsqrt.f32 %v2488_v22  ;;  %vm952_vm4 = vcmp.eq.f32.partialorder %v2440_v34, inf }
 0x1f1   : > { %v1830_v52 = vpop.eup %1829  ;;  %v1129_v53 = vsel %vm1128_vm2, %v2423_v15, %v1127_v45  ;;  %vm954_vm5 = vcmp.eq.f32.partialorder %v2440_v34, 0.0  ;;  %v955_v54 = vand.u32 2147483648, %v2440_v34  ;;  %1845 = vlog2.f32 %v1270_v12  ;;  %v2553_v7 = vpop.xlane.xlu0 %878 }
 0x1f2   : > { %v1832_v55 = vpop.eup %1831  ;;  %vm1149_vm6 = vcmp.eq.f32.partialorder %v2451_v47, inf  ;;  %vm1151_vm7 = vcmp.eq.f32.partialorder %v2451_v47, 0.0  ;;  %v1152_v58 = vand.u32 2147483648, %v2451_v47  ;;  %v2539_v44 = vsub.f32 %v1188_v29, %v1289_v24 }
 0x1f3   : > { %v1254_v61 = vmul.f32 1.442695, %v1227_v13  ;;  %v951_v62 = vmul.f32 %v1832_v55, %v2440_v34  ;;  %1847 = vrsqrt.f32 %v2507_v38  ;;  %v1132_v2 = vsel %vm1130_vm3, %v1131_v39, %v1129_v53 }
 0x1f4   : > { %vm973_vm8 = vcmp.eq.f32.partialorder %v2464_v57, inf  ;;  %vm975_vm9 = vcmp.eq.f32.partialorder %v2464_v57, 0.0  ;;  %1849 = vrsqrt.f32 %v2524_v14  ;;  %v1273_v4 = vadd.f32 1.0, %v1830_v52 }
 0x1f5   : > { %v1834_v63 = vpop.eup %1833  ;;  %v953_v51 = vsel %vm952_vm4, %v2440_v34, %v951_v62  ;;  %v976_v5 = vand.u32 2147483648, %v2464_v57  ;;  %1851 = vrsqrt.f32 %v2537_v60  ;;  %vm1142_vm11 = vcmp.eq.f32.partialorder %v2473_v8, inf }
 0x1f6   : > { %v1836_v15 = vpop.eup %1835  ;;  %v956_v42 = vsel %vm954_vm5, %v955_v54, %v953_v51  ;;  %v1148_v9 = vmul.f32 %v1834_v63, %v2451_v47  ;;  %vm1144_vm12 = vcmp.eq.f32.partialorder %v2473_v8, 0.0  ;;  %1853 = vpow2.f32 %v1254_v61 }
 0x1f7   : > { %v1838_v43 = vpop.eup %1837  ;;  %v2560_v10 = vsub.f32 %v956_v42, %v1132_v2  ;;  %v972_v11 = vmul.f32 %v1836_v15, %v2464_v57  ;;  %v1145_v17 = vand.u32 2147483648, %v2473_v8  ;;  %vm966_vm13 = vcmp.eq.f32.partialorder %v2488_v22, inf }
 0x1f8   : > { %v1840_v18 = vpop.eup %1839  ;;  %v1150_v34 = vsel %vm1149_vm6, %v2451_v47, %v1148_v9  ;;  %vm968_vm14 = vcmp.eq.f32.partialorder %v2488_v22, 0.0  ;;  %1855 = vrsqrt.f32 %v2553_v7  ;;  %v1272_v27 = vadd.f32 1.0, %v1838_v43 }
 0x1f9   : > { %v2570_v19 = vpop.eup %1841  ;;  %1857 = vlog2.f32 %v1273_v4  ;;  %v1210_v20 = vand.u32 2147483647, %v2560_v10  ;;  %v1153_v0 = vsel %vm1151_vm7, %v1152_v58, %v1150_v34  ;;  %v974_v1 = vsel %vm973_vm8, %v2464_v57, %v972_v11 }
 0x1fa   : > { %v1844_v30 = vpop.eup %1843  ;;  %v977_v32 = vsel %vm975_vm9, %v976_v5, %v974_v1  ;;  %v1141_v33 = vmul.f32 %v1840_v18, %v2473_v8  ;;  %v969_v6 = vand.u32 2147483648, %v2488_v22  ;;  %vm1156_vm15 = vcmp.eq.f32.partialorder %v2507_v38, inf }
 0x1fb   : > { %v1226_v25 = vsub.f32 0.0, %v1210_v20  ;;  %v965_v36 = vmul.f32 %v1844_v30, %v2488_v22  ;;  %v2584_v47 = vsub.f32 %v977_v32, %v1153_v0  ;;  %v1846_v29 = vpop.eup %1845  ;;  %vm1351_vm0 = vcmp.lt.s32.totalorder %v2495_v26, %v2382_v35 }
 0x1fc   : > { %v1143_v57 = vsel %vm1142_vm11, %v2473_v8, %v1141_v33  ;;  %vm1158_vm1 = vcmp.eq.f32.partialorder %v2507_v38, 0.0  ;;  %v1159_v45 = vand.u32 2147483648, %v2507_v38  ;;  %vm980_vm2 = vcmp.eq.f32.partialorder %v2524_v14, inf }
 0x1fd   : > { %v1848_v12 = vpop.eup %1847  ;;  %v1252_v24 = vmul.f32 1.442695, %v1226_v25  ;;  %v1146_v13 = vsel %vm1144_vm12, %v1145_v17, %v1143_v57  ;;  %v967_v39 = vsel %vm966_vm13, %v2488_v22, %v965_v36  ;;  %vm982_vm3 = vcmp.eq.f32.partialorder %v2524_v14, 0.0 }
 0x1fe   : > { %v1850_v52 = vpop.eup %1849  ;;  %1859 = vlog2.f32 %v1272_v27  ;;  %v970_v53 = vsel %vm968_vm14, %v969_v6, %v967_v39  ;;  %v1155_v54 = vmul.f32 %v1848_v12, %v2507_v38  ;;  %v1213_v55 = vand.u32 2147483647, %v2584_v47 }
 0x1ff   : > { %v1852_v58 = vpop.eup %1851  ;;  %1861 = vpow2.f32 %v1252_v24  ;;  %v2604_v61 = vsub.f32 %v970_v53, %v1146_v13  ;;  %v979_v8 = vmul.f32 %v1850_v52, %v2524_v14  ;;  %v983_v62 = vand.u32 2147483648, %v2524_v14 }
 0x200   : > { %v1157_v2 = vsel %vm1156_vm15, %v2507_v38, %v1155_v54  ;;  %v1162_v63 = vmul.f32 %v1852_v58, %v2537_v60  ;;  %vm1163_vm4 = vcmp.eq.f32.partialorder %v2537_v60, inf  ;;  %v1229_v22 = vsub.f32 0.0, %v1213_v55  ;;  %v1854_v4 = vpop.eup %1853 }
 0x201   : > { %v1212_v51 = vand.u32 2147483647, %v2604_v61  ;;  %v981_v5 = vsel %vm980_vm2, %v2524_v14, %v979_v8  ;;  %vm1165_vm5 = vcmp.eq.f32.partialorder %v2537_v60, 0.0  ;;  %v1160_v15 = vsel %vm1158_vm1, %v1159_v45, %v1157_v2 }
 0x202   : > { %v1856_v42 = vpop.eup %1855  ;;  %v1164_v9 = vsel %vm1163_vm4, %v2537_v60, %v1162_v63  ;;  %v1166_v43 = vand.u32 2147483648, %v2537_v60  ;;  %v984_v11 = vsel %vm982_vm3, %v983_v62, %v981_v5  ;;  %v1258_v17 = vmul.f32 1.442695, %v1229_v22 }
 0x203   : > { %v1858_v18 = vpop.eup %1857  ;;  %v1228_v34 = vsub.f32 0.0, %v1212_v51  ;;  %v986_v20 = vmul.f32 %v1856_v42, %v2553_v7  ;;  %vm987_vm6 = vcmp.eq.f32.partialorder %v2553_v7, inf  ;;  %v2626_v0 = vsub.f32 %v984_v11, %v1160_v15 }
 0x204   : > { %v1293_v1 = vmul.f32 0.6931472, %v1846_v29  ;;  %v990_v38 = vand.u32 2147483648, %v2553_v7  ;;  %v1167_v30 = vsel %vm1165_vm5, %v1166_v43, %v1164_v9  ;;  %1863 = vpow2.f32 %v1258_v17 }
 0x205   : > { %v1256_v27 = vmul.f32 1.442695, %v1228_v34  ;;  %v988_v60 = vsel %vm987_vm6, %v2553_v7, %v986_v20  ;;  %vm989_vm7 = vcmp.eq.f32.partialorder %v2553_v7, 0.0  ;;  %v1214_v14 = vand.u32 2147483647, %v2626_v0 }
 0x206   : > { %v1384_v32 = vadd.f32 %v2522_v49, %v2509_v41  ;;  %v1190_v33 = vmin.f32 %v2411_v3, 0.0  ;;  %v991_v6 = vsel %vm989_vm7, %v990_v38, %v988_v60  ;;  %v1275_v25 = vadd.f32 1.0, %v1854_v4 }
 0x207   : > { %v1367_v36 = vsel %vm1351_vm0, %v2539_v44, 0.0  ;;  %1865 = vpow2.f32 %v1256_v27  ;;  %v2639_v29 = vsub.f32 %v991_v6, %v1167_v30  ;;  %v1230_v57 = vsub.f32 0.0, %v1214_v14 }
 0x208   : > { %v1860_v45 = vpop.eup %1859  ;;  %v1385_v7 = vsel %vm1379_vm10, %v2516_v46, 0.0  ;;  %vm1352_vm8 = vcmp.lt.s32.totalorder %v2492_v23, %v2382_v35  ;;  %vm1353_vm9 = vcmp.lt.s32.totalorder %v2498_v31, %v2382_v35  ;;  %v1336_v3 = vadd.s32 56, %v2359_v16 }
 0x209   : > { %v1862_v41 = vpop.eup %1861  ;;  %v1317_v26 = vsub.f32 %v1189_v37, %v2518_v48  ;;  %v1318_v49 = vsub.f32 %v1190_v33, %v1293_v1  ;;  %v1215_v44 = vand.u32 2147483647, %v2639_v29  ;;  %v1260_v12 = vmul.f32 1.442695, %v1230_v57 }
 0x20a   : > { %v1386_v24 = vadd.f32 %v1385_v7, %v1384_v32  ;;  %v1387_v46 = vsel %vm1379_vm10, %v1367_v36, 0.0  ;;  %v1274_v13 = vadd.f32 1.0, %v1862_v41  ;;  %1867 = vlog2.f32 %v1275_v25 }
 0x20b   : > { %v1295_v39 = vmul.f32 0.6931472, %v2570_v19  ;;  %v1297_v52 = vmul.f32 0.6931472, %v1860_v45  ;;  %v1231_v53 = vsub.f32 0.0, %v1215_v44  ;;  %1869 = vpow2.f32 %v1260_v12 }
 0x20c   : > { %v1191_v54 = vmin.f32 %v2388_v40, 0.0  ;;  %v1192_v55 = vmin.f32 %v2453_v50, 0.0  ;;  %1871 = vlog2.f32 %v1274_v13  ;;  %v1337_v56 = vadd.s32 64, %v2359_v16 }
 0x20d   : > { %v1368_v37 = vsel %vm1352_vm8, %v1317_v26, 0.0  ;;  %v1388_v48 = vadd.f32 %v1387_v46, %v1386_v24  ;;  %v1369_v58 = vsel %vm1353_vm9, %v1318_v49, 0.0  ;;  %v1262_v19 = vmul.f32 1.442695, %v1231_v53 }
 0x20e   : > { %v1864_v8 = vpop.eup %1863  ;;  %v1319_v62 = vsub.f32 %v1191_v54, %v1295_v39  ;;  %v1320_v2 = vsub.f32 %v1192_v55, %v1297_v52  ;;  %v1389_v50 = vsel %vm1379_vm10, %v1368_v37, 0.0  ;;  %vm1354_vm11 = vcmp.lt.s32.totalorder %v1336_v3, %v2382_v35 }
 0x20f   : > { %1873 = vpow2.f32 %v1262_v19  ;;  %v1277_v40 = vadd.f32 1.0, %v1864_v8  ;;  %vm1355_vm12 = vcmp.lt.s32.totalorder %v1337_v56, %v2382_v35  ;;  %v1391_v23 = vsel %vm1379_vm10, %v1369_v58, 0.0 }
 0x210   : > { %v1299_v22 = vmul.f32 0.6931472, %v1858_v18  ;;  %v1338_v31 = vadd.s32 72, %v2359_v16  ;;  %v1390_v4 = vadd.f32 %v1389_v50, %v1388_v48  ;;  %v1193_v5 = vmin.f32 %v2434_v28, 0.0 }
 0x211   : > { %v1866_v63 = vpop.eup %1865  ;;  %1875 = vlog2.f32 %v1277_v40  ;;  %v1370_v15 = vsel %vm1354_vm11, %v1319_v62, 0.0  ;;  %v1371_v42 = vsel %vm1355_vm12, %v1320_v2, 0.0  ;;  %v1339_v11 = vadd.s32 80, %v2359_v16 }
 0x212   : > { %v1276_v51 = vadd.f32 1.0, %v1866_v63  ;;  %v1392_v9 = vadd.f32 %v1391_v23, %v1390_v4  ;;  %v1321_v34 = vsub.f32 %v1193_v5, %v1299_v22  ;;  %vm1356_vm13 = vcmp.lt.s32.totalorder %v1338_v31, %v2382_v35 }
 0x213   : > { %v1340_v1 = vadd.s32 88, %v2359_v16  ;;  %v1393_v38 = vsel %vm1379_vm10, %v1370_v15, 0.0  ;;  %v1395_v30 = vsel %vm1379_vm10, %v1371_v42, 0.0  ;;  %v1194_v28 = vmin.f32 %v2560_v10, 0.0 }
 0x214   : > { %v1868_v43 = vpop.eup %1867  ;;  %1877 = vlog2.f32 %v1276_v51  ;;  %v1394_v14 = vadd.f32 %v1393_v38, %v1392_v9  ;;  %vm1357_vm14 = vcmp.lt.s32.totalorder %v1339_v11, %v2382_v35  ;;  %v1195_v33 = vmin.f32 %v2486_v21, 0.0 }
 0x215   : > { %v1870_v17 = vpop.eup %1869  ;;  %v1303_v60 = vmul.f32 0.6931472, %v1868_v43  ;;  %v1372_v25 = vsel %vm1356_vm13, %v1321_v34, 0.0  ;;  %vm1358_vm15 = vcmp.lt.s32.totalorder %v1340_v1, %v2382_v35  ;;  %v1341_v3 = vadd.s32 96, %v2359_v16 }
 0x216   : > { %v1872_v20 = vpop.eup %1871  ;;  %v1278_v18 = vadd.f32 1.0, %v1870_v17  ;;  %v1396_v36 = vadd.f32 %v1395_v30, %v1394_v14  ;;  %v1342_v10 = vadd.s32 104, %v2359_v16  ;;  %v1397_v49 = vsel %vm1379_vm10, %v1372_v25, 0.0 }
 0x217   : > { %v1301_v27 = vmul.f32 0.6931472, %v1872_v20  ;;  %v1323_v7 = vsub.f32 %v1195_v33, %v1303_v60  ;;  %v1197_v21 = vmin.f32 %v2584_v47, 0.0  ;;  %v1196_v46 = vmin.f32 %v2604_v61, 0.0 }
 0x218   : > { %1879 = vlog2.f32 %v1278_v18  ;;  %v1398_v12 = vadd.f32 %v1397_v49, %v1396_v36  ;;  %v1343_v54 = vadd.s32 112, %v2359_v16  ;;  %vm1359_vm0 = vcmp.lt.s32.totalorder %v1341_v3, %v2382_v35 }
 0x219   : > { %v1874_v32 = vpop.eup %1873  ;;  %v1322_v6 = vsub.f32 %v1194_v28, %v1301_v27  ;;  %v1374_v52 = vsel %vm1358_vm15, %v1323_v7, 0.0  ;;  %vm1360_vm1 = vcmp.lt.s32.totalorder %v1342_v10, %v2382_v35  ;;  %v1198_v47 = vmin.f32 %v2626_v0, 0.0 }
 0x21a   : > { %v1279_v57 = vadd.f32 1.0, %v1874_v32  ;;  %v1401_v37 = vsel %vm1379_vm10, %v1374_v52, 0.0  ;;  %v1344_v8 = vadd.s32 120, %v2359_v16  ;;  %vm1361_vm2 = vcmp.lt.s32.totalorder %v1343_v54, %v2382_v35 }
 0x21b   : > { %v1876_v45 = vpop.eup %1875  ;;  %v1373_v41 = vsel %vm1357_vm14, %v1322_v6, 0.0  ;;  %v1199_v63 = vmin.f32 %v2639_v29, 0.0 }
 0x21c   : > { %v1307_v26 = vmul.f32 0.6931472, %v1876_v45  ;;  %1881 = vlog2.f32 %v1279_v57  ;;  %v1399_v44 = vsel %vm1379_vm10, %v1373_v41, 0.0  ;;  %vm1362_vm3 = vcmp.lt.s32.totalorder %v1344_v8, %v2382_v35 }
 0x21d   : > { %v1400_v53 = vadd.f32 %v1399_v44, %v1398_v12  ;;  %v1421_v35 = vand.u32 127, %v1328_v59 }
 0x21e   : > { %v1878_v24 = vpop.eup %1877  ;;  %v1325_v39 = vsub.f32 %v1197_v21, %v1307_v26 }
 0x21f   : > { %v1305_v13 = vmul.f32 0.6931472, %v1878_v24  ;;  %v1402_v19 = vadd.f32 %v1401_v37, %v1400_v53  ;;  %vm1422_vm4 = vcmp.eq.s32.totalorder %v1421_v35, 0 }
 0x220   : > { %v1376_v58 = vsel %vm1360_vm1, %v1325_v39, 0.0 }
 0x221   : > { %v1324_v55 = vsub.f32 %v1196_v46, %v1305_v13  ;;  %v1405_v23 = vsel %vm1379_vm10, %v1376_v58, 0.0 }
 0x222   : > { %v1880_v56 = vpop.eup %1879 }
 0x223   : > { %v1309_v48 = vmul.f32 0.6931472, %v1880_v56  ;;  %v1375_v61 = vsel %vm1359_vm0, %v1324_v55, 0.0 }
 0x224   : > { %v1403_v62 = vsel %vm1379_vm10, %v1375_v61, 0.0 }
 0x225   : > { %v1326_v2 = vsub.f32 %v1198_v47, %v1309_v48  ;;  %v1404_v40 = vadd.f32 %v1403_v62, %v1402_v19 }
 0x226   : > { %v1882_v50 = vpop.eup %1881 }
 0x227   : > { %v1311_v0 = vmul.f32 0.6931472, %v1882_v50  ;;  %v1377_v22 = vsel %vm1361_vm2, %v1326_v2, 0.0  ;;  %v1406_v31 = vadd.f32 %v1405_v23, %v1404_v40 }
 0x228   : > { %v1407_v4 = vsel %vm1379_vm10, %v1377_v22, 0.0 }
 0x229   : > { %v1327_v16 = vsub.f32 %v1199_v63, %v1311_v0  ;;  %v1408_v5 = vadd.f32 %v1407_v4, %v1406_v31 }
 0x22b   : > { %v1378_v51 = vsel %vm1362_vm3, %v1327_v16, 0.0 }
 0x22c   : > { %v1409_v15 = vsel %vm1379_vm10, %v1378_v51, 0.0 }
 0x22d   : > { %v1410_v42 = vadd.f32 %v1409_v15, %v1408_v5 }
 0x22f   : > { %1411 = vadd.xlane.f32.xlu0 %v1410_v42 }
 0x2bc   : > { %v1412_v9 = vpop.xlane.xlu0 %1411 }
 0x2bd   : > { %v1413_v43 = vrot.slane %v1412_v9, 4 }
 0x2bf   : > { %v1414_v11 = vadd.f32 %v1413_v43, %v1412_v9 }
 0x2c1   : > { %v1415_v29 = vrot.slane %v1414_v11, 2 }
 0x2c3   : > { %v1416_v17 = vadd.f32 %v1415_v29, %v1414_v11 }
 0x2c5   : > { %v1417_v34 = vrot.slane %v1416_v17, 1 }
 0x2c7   : > { %v1418_v20 = vadd.f32 %v1417_v34, %v1416_v17 }
 0x2c9   : > { %1712 = vpush %v1418_v20 }
 0x2fa   : > { %s1713_s29 = spop %1712 }
 0x2fb   : > { %v1423_v18 = vstv %s1713_s29 }
 0x2fc   : > { %v1424_v1 = vsel %vm1422_vm4, %v1423_v18, 0.0 }
 0x2fd   : > { %1425 = vst [vmem:[%s297_s27] sm:$0x1] %v1424_v1 }
 0x2fe   : > { %1920 = shalt.err (!%p1917_p0)
}
 0x2ff   : > { %s1921_s22 = scalar_lea.hbm %s2705_s9, 16  ;;  %s1925_s26 = scalar_lea.hbm %s2753_s7, 64 }
 0x300   : > { %p1922_p3 = scmp.ne.s32.totalorder %s2705_s9, %s1921_s22  ;;  %p1926_p6 = scmp.lt.u32.totalorder %s2705_s9, %s2753_s7 }
 0x301   : > { %p1927_p7 = scmp.lt.u32.totalorder %s1925_s26, %s1921_s22  ;;  %p1929_p9 = scmp.lt.u32.totalorder %s1921_s22, %s2705_s9 }
 0x302   : > { %p1923_p4 = pnand %p1922_p3, %p2060_p1 }
 0x303   : > { %p1928_p8 = por %p1927_p7, %p1926_p6 }
 0x304   : > { %p1924_p5 = pneg %p1923_p4 }
 0x305   : > { %p1930_p10 = por %p1929_p9, %p1928_p8 }
 0x307   : > { %p1931_p11 = pnand %p1930_p10, %p1924_p5 }
 0x309   : > { %1934 = shalt.err (!%p1931_p11)
}
 0x30a   : > { %1714 = dma.vmem_to_hbm [thread:$0]  (%p2060_p1), %s2707_s28, 16, %s2705_s9, %s1427_s0  }
 0x30b PF: > { %p1720_p12 = scmp.ge.s32.totalorder %s1971_s12, 2  ;;  %s1451_s27 = sand.u32 1, %s1959_s1  }
 0x30c   : > { %s1452_s29 = scalar_lea.sflag [#allocation6], %s1451_s27 }
 0x30d   : > { %p1717_p13 = pnand %p1720_p12, %p2064_p2 }
 0x30f   : > { %1954 = dma.done.wait (!%p1717_p13), %s1452_s29, 16  }
 0x310   : > { %1956 = vsyncadd (!%p1717_p13), %s1452_s29, 4294967280  ;;  %p27_p0 = scmp.ge.s32.totalorder %s2047_s15, 6   ;;  %s2757_s1 = smov %s1963_s10 }
 0x311   : > { %s2758_s10 = smov %s1967_s11  ;;  %s2759_s11 = smov %s2058_s18 }
 0x312   : > { %s2760_s12 = smov %s2047_s15  ;;  %29 = sbr.rel (!%p27_p0) target bundleno = 28 (0x1c), region = 87 }
 0x319   :  { %1456 = vsyncpa [#allocation6], 1 }
 0x31a   :  { %1458 = vsyncpa [#allocation6 + $0x1], 1 }

</bundles_post_ra>
